<compile_context>
chip_gen: v6e
topology: v6e:2x2x1
jax: 0.10.0
libtpu: 0.0.40
codegen_flags: <defaults>
</compile_context>

<pallas_src>
import functools

import jax
import jax.numpy as jnp
from jax import lax
from jax.experimental import pallas as pl
from jax.experimental.pallas import tpu as pltpu


def _rsum(x):
    # Full reduction of a 2-D tile to a (1, 1) array (keeps a 2-D layout).
    return jnp.sum(jnp.sum(x, axis=1, keepdims=True), axis=0, keepdims=True)


def eccv_loss_kernel(alpha, beta, n, c, x_ref, w_ref, tcol_ref, trow_ref, out_ref):
    x = x_ref[...]            # (N, D)  f32 embeddings
    w = w_ref[...]            # (C, D)  f32 raw proxy matrix
    t_col = tcol_ref[...]     # (N, 1)  i32 labels (column layout)
    t_row = trow_ref[...]     # (1, N)  i32 labels (row layout)

    # --- in-kernel l2_norm of the proxies (rows). No epsilon, matching torch. ---
    inv_norm = 1.0 / jnp.sqrt(jnp.sum(w * w, axis=1, keepdims=True))   # (C, 1)
    w_n = w * inv_norm                                                 # (C, D)

    # Transposed-RHS contractions (same NT pattern as the flash-attention kernel),
    # f32 operands, f32 accumulate.
    nt = (((1,), (1,)), ((), ()))
    cos_theta = jnp.clip(
        lax.dot_general(x, w_n, nt, preferred_element_type=jnp.float32),
        -1.0, 1.0)                                                     # (N, C)
    sim_mat = lax.dot_general(x, x, nt,
                              preferred_element_type=jnp.float32)      # (N, N)

    phi = cos_theta - beta

    # one-hot "index" from labels (replaces scatter_ + byte-mask indexing)
    col = lax.broadcasted_iota(jnp.int32, (n, c), 1)
    onehot = (col == t_col).astype(jnp.float32)                        # (N, C)
    negm = 1.0 - onehot

    # mean proxy similarities (masked sums / counts)
    mpp = _rsum(cos_theta * onehot) / _rsum(onehot)
    mpn = _rsum(cos_theta * negm) / _rsum(negm)

    # output[index] = phi[index]; output *= alpha
    output = jnp.where(onehot > 0.0, phi, cos_theta) * alpha           # (N, C)

    margin = jnp.sum(output * onehot, axis=1, keepdims=True)           # (N, 1)
    row_max = jnp.max(output, axis=1, keepdims=True)                   # (N, 1)

    # stabilised log-sum-exp over the negative columns (exact identity vs. torch)
    neg_max = jnp.max(jnp.where(onehot > 0.0, -jnp.inf, output),
                      axis=1, keepdims=True)                           # (N, 1)
    logit = neg_max + jnp.log(
        jnp.sum(jnp.exp(output - neg_max) * negm, axis=1, keepdims=True))

    loss_vec = logit - margin
    loss_mask = (row_max - margin > 0.0).astype(jnp.float32)
    loss = _rsum(loss_vec * loss_mask) * (1.0 / n)   # torch divides by batch size n

    # prec = mean(argmax(output, 1) == targets); first-max tie-break like torch.
    # (float equality vs. row_max / labels is exact: C < 2^24.)
    is_max = output == row_max
    colf = col.astype(jnp.float32)
    first_max = jnp.min(jnp.where(is_max, colf, jnp.float32(c)),
                        axis=1, keepdims=True)                         # (N, 1)
    correct = (first_max == t_col.astype(jnp.float32)).astype(jnp.float32)
    prec = _rsum(correct) * (1.0 / n)

    # pairwise sample stats; sim_label via VPU broadcast compare (no MXU dot).
    # Diagonal (i == i) kept, exactly as in the reference.
    sim_label = (t_col == t_row).astype(jnp.float32)                   # (N, N)
    sim_neg = 1.0 - sim_label
    mps = _rsum(sim_mat * sim_label) / _rsum(sim_label)
    mns = _rsum(sim_mat * sim_neg) / _rsum(sim_neg)

    # pack the six scalars into one lane-dense row -> single store / write-back DMA
    lane = lax.broadcasted_iota(jnp.int32, out_ref.shape, 1)
    packed = (jnp.where(lane == 0, loss, 0.0)
              + jnp.where(lane == 1, prec, 0.0)
              + jnp.where(lane == 2, mpp, 0.0)
              + jnp.where(lane == 3, mpn, 0.0)
              + jnp.where(lane == 4, mps, 0.0)
              + jnp.where(lane == 5, mns, 0.0))
    out_ref[...] = packed


def eccv_loss(inputs, targets, kernel, alpha=10.0, beta=2.0):
    """Pallas forward pass of EccvLoss.

    Returns (loss, prec, mean_proxy_pos, mean_proxy_neg, mean_pos_sim, mean_neg_sim).
    """
    n, d = inputs.shape
    c, d2 = kernel.shape
    assert d == d2

    x32 = inputs.astype(jnp.float32)
    w32 = kernel.astype(jnp.float32)
    t_col = targets.astype(jnp.int32).reshape(n, 1)
    t_row = targets.astype(jnp.int32).reshape(1, n)   # 32 B extra: enables VPU sim_label

    vmem = pl.BlockSpec(memory_space=pltpu.MemorySpace.VMEM)
    out = pl.pallas_call(
        functools.partial(eccv_loss_kernel, float(alpha), float(beta), n, c),
        out_shape=jax.ShapeDtypeStruct((1, 128), jnp.float32),
        in_specs=[vmem, vmem, vmem, vmem],
        out_specs=vmem,
    )(x32, w32, t_col, t_row)

    return (out[0, 0], out[0, 1], out[0, 2], out[0, 3], out[0, 4], out[0, 5])


def init_proxy_kernel(key, num_classes, feat_dim):
    # Replicates: torch.Tensor(C, D).uniform_(-1, 1).renorm_(2, 1, 1e-5).mul_(1e5)
    # renorm_ with dim=1 renormalizes each column to 2-norm <= 1e-5, then *1e5.
    w = jax.random.uniform(key, (num_classes, feat_dim),
                           minval=-1.0, maxval=1.0, dtype=jnp.float32)
    col_norm = jnp.sqrt(jnp.sum(w * w, axis=0, keepdims=True))
    scale = jnp.minimum(1.0, 1e-5 / col_norm)
    return w * scale * 1e5


if __name__ == "__main__":
    N, D, C = 8, 2048, 98   # batch=8; feature dim / num classes fixed by the module

    key = jax.random.PRNGKey(0)
    k_x, k_t, k_w = jax.random.split(key, 3)

    x = jax.random.normal(k_x, (N, D), dtype=jnp.float32)
    x = x / jnp.sqrt(jnp.sum(x * x, axis=1, keepdims=True))   # l2-normalized embeddings
    targets = jax.random.randint(k_t, (N,), 0, C, dtype=jnp.int32)
    proxy_kernel = init_proxy_kernel(k_w, C, D)

    results = eccv_loss(x, targets, proxy_kernel, alpha=10.0, beta=2.0)
    results = jax.block_until_ready(results)
    print("KERNEL_OK")
</pallas_src>

<mosaic_0001>
module attributes {stable_mosaic.version = 11 : i64} {
  func.func @eccv_loss_kernel(%arg0: memref<8x2048xf32, #tpu.memory_space<vmem>>, %arg1: memref<98x2048xf32, #tpu.memory_space<vmem>>, %arg2: memref<8x1xi32, #tpu.memory_space<vmem>>, %arg3: memref<1x8xi32, #tpu.memory_space<vmem>>, %arg4: memref<1x128xf32, #tpu.memory_space<vmem>>) attributes {dimension_semantics = [], scalar_prefetch = 0 : i64, scratch_operands = 0 : i64, tpu.core_type = #tpu.core_type<tc>} {
    %c0 = arith.constant 0 : index
    %c0_0 = arith.constant 0 : index
    %0 = vector.load %arg0[%c0, %c0_0] : memref<8x2048xf32, #tpu.memory_space<vmem>>, vector<8x2048xf32>
    %c0_1 = arith.constant 0 : index
    %c0_2 = arith.constant 0 : index
    %1 = vector.load %arg1[%c0_1, %c0_2] : memref<98x2048xf32, #tpu.memory_space<vmem>>, vector<98x2048xf32>
    %c0_3 = arith.constant 0 : index
    %c0_4 = arith.constant 0 : index
    %2 = vector.load %arg2[%c0_3, %c0_4] : memref<8x1xi32, #tpu.memory_space<vmem>>, vector<8x1xi32>
    %c0_5 = arith.constant 0 : index
    %c0_6 = arith.constant 0 : index
    %3 = vector.load %arg3[%c0_5, %c0_6] : memref<1x8xi32, #tpu.memory_space<vmem>>, vector<1x8xi32>
    %4 = arith.mulf %1, %1 : vector<98x2048xf32>
    %cst = arith.constant dense<0.000000e+00> : vector<98xf32>
    %5 = vector.multi_reduction <add>, %4, %cst [1] : vector<98x2048xf32> to vector<98xf32>
    %6 = vector.shape_cast %5 : vector<98xf32> to vector<98x1xf32>
    %7 = math.sqrt %6 : vector<98x1xf32>
    %cst_7 = arith.constant 1.000000e+00 : f32
    %8 = vector.broadcast %cst_7 : f32 to vector<98x1xf32>
    %9 = arith.divf %8, %7 : vector<98x1xf32>
    %10 = vector.broadcast %9 : vector<98x1xf32> to vector<98x2048xf32>
    %11 = arith.mulf %1, %10 : vector<98x2048xf32>
    %cst_8 = arith.constant dense<0.000000e+00> : vector<8x98xf32>
    %12 = tpu.matmul %0, %11, %cst_8 {dimension_numbers = #tpu.dot_dimension_numbers<[1], [1], [0], [0], [0, 0, 1, 0], [], []>} : vector<8x2048xf32>, vector<98x2048xf32>, vector<8x98xf32> -> vector<8x98xf32>
    %cst_9 = arith.constant -1.000000e+00 : f32
    %cst_10 = arith.constant 1.000000e+00 : f32
    %13 = vector.broadcast %cst_9 : f32 to vector<8x98xf32>
    %14 = arith.maximumf %13, %12 : vector<8x98xf32>
    %15 = vector.broadcast %cst_10 : f32 to vector<8x98xf32>
    %16 = arith.minimumf %15, %14 : vector<8x98xf32>
    %cst_11 = arith.constant dense<0.000000e+00> : vector<8x8xf32>
    %17 = tpu.matmul %0, %0, %cst_11 {dimension_numbers = #tpu.dot_dimension_numbers<[1], [1], [0], [0], [0, 0, 1, 0], [], []>} : vector<8x2048xf32>, vector<8x2048xf32>, vector<8x8xf32> -> vector<8x8xf32>
    %cst_12 = arith.constant 2.000000e+00 : f32
    %18 = vector.broadcast %cst_12 : f32 to vector<8x98xf32>
    %19 = arith.subf %16, %18 : vector<8x98xf32>
    %20 = tpu.iota {dimensions = array<i32: 1>} : vector<8x98xi32>
    %21 = vector.broadcast %2 : vector<8x1xi32> to vector<8x98xi32>
    %22 = arith.cmpi eq, %20, %21 : vector<8x98xi32>
    %23 = arith.extui %22 : vector<8x98xi1> to vector<8x98xi32>
    %24 = arith.sitofp %23 : vector<8x98xi32> to vector<8x98xf32>
    %cst_13 = arith.constant 1.000000e+00 : f32
    %25 = vector.broadcast %cst_13 : f32 to vector<8x98xf32>
    %26 = arith.subf %25, %24 : vector<8x98xf32>
    %27 = arith.mulf %16, %24 : vector<8x98xf32>
    %cst_14 = arith.constant dense<0.000000e+00> : vector<8xf32>
    %28 = vector.multi_reduction <add>, %27, %cst_14 [1] : vector<8x98xf32> to vector<8xf32>
    %29 = vector.shape_cast %28 : vector<8xf32> to vector<8x1xf32>
    %cst_15 = arith.constant dense<0.000000e+00> : vector<1xf32>
    %30 = vector.multi_reduction <add>, %29, %cst_15 [0] : vector<8x1xf32> to vector<1xf32>
    %31 = vector.shape_cast %30 : vector<1xf32> to vector<1x1xf32>
    %cst_16 = arith.constant dense<0.000000e+00> : vector<8xf32>
    %32 = vector.multi_reduction <add>, %24, %cst_16 [1] : vector<8x98xf32> to vector<8xf32>
    %33 = vector.shape_cast %32 : vector<8xf32> to vector<8x1xf32>
    %cst_17 = arith.constant dense<0.000000e+00> : vector<1xf32>
    %34 = vector.multi_reduction <add>, %33, %cst_17 [0] : vector<8x1xf32> to vector<1xf32>
    %35 = vector.shape_cast %34 : vector<1xf32> to vector<1x1xf32>
    %36 = arith.divf %31, %35 : vector<1x1xf32>
    %37 = arith.mulf %16, %26 : vector<8x98xf32>
    %cst_18 = arith.constant dense<0.000000e+00> : vector<8xf32>
    %38 = vector.multi_reduction <add>, %37, %cst_18 [1] : vector<8x98xf32> to vector<8xf32>
    %39 = vector.shape_cast %38 : vector<8xf32> to vector<8x1xf32>
    %cst_19 = arith.constant dense<0.000000e+00> : vector<1xf32>
    %40 = vector.multi_reduction <add>, %39, %cst_19 [0] : vector<8x1xf32> to vector<1xf32>
    %41 = vector.shape_cast %40 : vector<1xf32> to vector<1x1xf32>
    %cst_20 = arith.constant dense<0.000000e+00> : vector<8xf32>
    %42 = vector.multi_reduction <add>, %26, %cst_20 [1] : vector<8x98xf32> to vector<8xf32>
    %43 = vector.shape_cast %42 : vector<8xf32> to vector<8x1xf32>
    %cst_21 = arith.constant dense<0.000000e+00> : vector<1xf32>
    %44 = vector.multi_reduction <add>, %43, %cst_21 [0] : vector<8x1xf32> to vector<1xf32>
    %45 = vector.shape_cast %44 : vector<1xf32> to vector<1x1xf32>
    %46 = arith.divf %41, %45 : vector<1x1xf32>
    %cst_22 = arith.constant 0.000000e+00 : f32
    %47 = vector.broadcast %cst_22 : f32 to vector<8x98xf32>
    %48 = arith.cmpf ogt, %24, %47 : vector<8x98xf32>
    %49 = arith.select %48, %19, %16 : vector<8x98xi1>, vector<8x98xf32>
    %cst_23 = arith.constant 1.000000e+01 : f32
    %50 = vector.broadcast %cst_23 : f32 to vector<8x98xf32>
    %51 = arith.mulf %49, %50 : vector<8x98xf32>
    %52 = arith.mulf %51, %24 : vector<8x98xf32>
    %cst_24 = arith.constant dense<0.000000e+00> : vector<8xf32>
    %53 = vector.multi_reduction <add>, %52, %cst_24 [1] : vector<8x98xf32> to vector<8xf32>
    %54 = vector.shape_cast %53 : vector<8xf32> to vector<8x1xf32>
    %cst_25 = arith.constant dense<0xFF800000> : vector<8xf32>
    %55 = vector.multi_reduction <maximumf>, %51, %cst_25 [1] : vector<8x98xf32> to vector<8xf32>
    %56 = vector.shape_cast %55 : vector<8xf32> to vector<8x1xf32>
    %cst_26 = arith.constant 0.000000e+00 : f32
    %57 = vector.broadcast %cst_26 : f32 to vector<8x98xf32>
    %58 = arith.cmpf ogt, %24, %57 : vector<8x98xf32>
    %cst_27 = arith.constant 0xFF800000 : f32
    %59 = vector.broadcast %cst_27 : f32 to vector<8x98xf32>
    %60 = arith.select %58, %59, %51 : vector<8x98xi1>, vector<8x98xf32>
    %cst_28 = arith.constant dense<0xFF800000> : vector<8xf32>
    %61 = vector.multi_reduction <maximumf>, %60, %cst_28 [1] : vector<8x98xf32> to vector<8xf32>
    %62 = vector.shape_cast %61 : vector<8xf32> to vector<8x1xf32>
    %63 = vector.broadcast %62 : vector<8x1xf32> to vector<8x98xf32>
    %64 = arith.subf %51, %63 : vector<8x98xf32>
    %65 = math.exp %64 : vector<8x98xf32>
    %66 = arith.mulf %65, %26 : vector<8x98xf32>
    %cst_29 = arith.constant dense<0.000000e+00> : vector<8xf32>
    %67 = vector.multi_reduction <add>, %66, %cst_29 [1] : vector<8x98xf32> to vector<8xf32>
    %68 = vector.shape_cast %67 : vector<8xf32> to vector<8x1xf32>
    %69 = math.log %68 : vector<8x1xf32>
    %70 = arith.addf %62, %69 : vector<8x1xf32>
    %71 = arith.subf %70, %54 : vector<8x1xf32>
    %72 = arith.subf %56, %54 : vector<8x1xf32>
    %cst_30 = arith.constant 0.000000e+00 : f32
    %73 = vector.broadcast %cst_30 : f32 to vector<8x1xf32>
    %74 = arith.cmpf ogt, %72, %73 : vector<8x1xf32>
    %75 = arith.extui %74 : vector<8x1xi1> to vector<8x1xi32>
    %76 = arith.sitofp %75 : vector<8x1xi32> to vector<8x1xf32>
    %77 = arith.mulf %71, %76 : vector<8x1xf32>
    %cst_31 = arith.constant dense<0.000000e+00> : vector<8xf32>
    %78 = vector.multi_reduction <add>, %77, %cst_31 [1] : vector<8x1xf32> to vector<8xf32>
    %79 = vector.shape_cast %78 : vector<8xf32> to vector<8x1xf32>
    %cst_32 = arith.constant dense<0.000000e+00> : vector<1xf32>
    %80 = vector.multi_reduction <add>, %79, %cst_32 [0] : vector<8x1xf32> to vector<1xf32>
    %81 = vector.shape_cast %80 : vector<1xf32> to vector<1x1xf32>
    %cst_33 = arith.constant 1.250000e-01 : f32
    %82 = vector.broadcast %cst_33 : f32 to vector<1x1xf32>
    %83 = arith.mulf %81, %82 : vector<1x1xf32>
    %84 = vector.broadcast %56 : vector<8x1xf32> to vector<8x98xf32>
    %85 = arith.cmpf oeq, %51, %84 : vector<8x98xf32>
    %86 = arith.sitofp %20 : vector<8x98xi32> to vector<8x98xf32>
    %cst_34 = arith.constant 9.800000e+01 : f32
    %87 = vector.broadcast %cst_34 : f32 to vector<8x98xf32>
    %88 = arith.select %85, %86, %87 : vector<8x98xi1>, vector<8x98xf32>
    %cst_35 = arith.constant dense<0x7F800000> : vector<8xf32>
    %89 = vector.multi_reduction <minimumf>, %88, %cst_35 [1] : vector<8x98xf32> to vector<8xf32>
    %90 = vector.shape_cast %89 : vector<8xf32> to vector<8x1xf32>
    %91 = arith.sitofp %2 : vector<8x1xi32> to vector<8x1xf32>
    %92 = arith.cmpf oeq, %90, %91 : vector<8x1xf32>
    %93 = arith.extui %92 : vector<8x1xi1> to vector<8x1xi32>
    %94 = arith.sitofp %93 : vector<8x1xi32> to vector<8x1xf32>
    %cst_36 = arith.constant dense<0.000000e+00> : vector<8xf32>
    %95 = vector.multi_reduction <add>, %94, %cst_36 [1] : vector<8x1xf32> to vector<8xf32>
    %96 = vector.shape_cast %95 : vector<8xf32> to vector<8x1xf32>
    %cst_37 = arith.constant dense<0.000000e+00> : vector<1xf32>
    %97 = vector.multi_reduction <add>, %96, %cst_37 [0] : vector<8x1xf32> to vector<1xf32>
    %98 = vector.shape_cast %97 : vector<1xf32> to vector<1x1xf32>
    %cst_38 = arith.constant 1.250000e-01 : f32
    %99 = vector.broadcast %cst_38 : f32 to vector<1x1xf32>
    %100 = arith.mulf %98, %99 : vector<1x1xf32>
    %101 = vector.broadcast %2 : vector<8x1xi32> to vector<8x8xi32>
    %102 = vector.broadcast %3 : vector<1x8xi32> to vector<8x8xi32>
    %103 = arith.cmpi eq, %101, %102 : vector<8x8xi32>
    %104 = arith.extui %103 : vector<8x8xi1> to vector<8x8xi32>
    %105 = arith.sitofp %104 : vector<8x8xi32> to vector<8x8xf32>
    %cst_39 = arith.constant 1.000000e+00 : f32
    %106 = vector.broadcast %cst_39 : f32 to vector<8x8xf32>
    %107 = arith.subf %106, %105 : vector<8x8xf32>
    %108 = arith.mulf %17, %105 : vector<8x8xf32>
    %cst_40 = arith.constant dense<0.000000e+00> : vector<8xf32>
    %109 = vector.multi_reduction <add>, %108, %cst_40 [1] : vector<8x8xf32> to vector<8xf32>
    %110 = vector.shape_cast %109 : vector<8xf32> to vector<8x1xf32>
    %cst_41 = arith.constant dense<0.000000e+00> : vector<1xf32>
    %111 = vector.multi_reduction <add>, %110, %cst_41 [0] : vector<8x1xf32> to vector<1xf32>
    %112 = vector.shape_cast %111 : vector<1xf32> to vector<1x1xf32>
    %cst_42 = arith.constant dense<0.000000e+00> : vector<8xf32>
    %113 = vector.multi_reduction <add>, %105, %cst_42 [1] : vector<8x8xf32> to vector<8xf32>
    %114 = vector.shape_cast %113 : vector<8xf32> to vector<8x1xf32>
    %cst_43 = arith.constant dense<0.000000e+00> : vector<1xf32>
    %115 = vector.multi_reduction <add>, %114, %cst_43 [0] : vector<8x1xf32> to vector<1xf32>
    %116 = vector.shape_cast %115 : vector<1xf32> to vector<1x1xf32>
    %117 = arith.divf %112, %116 : vector<1x1xf32>
    %118 = arith.mulf %17, %107 : vector<8x8xf32>
    %cst_44 = arith.constant dense<0.000000e+00> : vector<8xf32>
    %119 = vector.multi_reduction <add>, %118, %cst_44 [1] : vector<8x8xf32> to vector<8xf32>
    %120 = vector.shape_cast %119 : vector<8xf32> to vector<8x1xf32>
    %cst_45 = arith.constant dense<0.000000e+00> : vector<1xf32>
    %121 = vector.multi_reduction <add>, %120, %cst_45 [0] : vector<8x1xf32> to vector<1xf32>
    %122 = vector.shape_cast %121 : vector<1xf32> to vector<1x1xf32>
    %cst_46 = arith.constant dense<0.000000e+00> : vector<8xf32>
    %123 = vector.multi_reduction <add>, %107, %cst_46 [1] : vector<8x8xf32> to vector<8xf32>
    %124 = vector.shape_cast %123 : vector<8xf32> to vector<8x1xf32>
    %cst_47 = arith.constant dense<0.000000e+00> : vector<1xf32>
    %125 = vector.multi_reduction <add>, %124, %cst_47 [0] : vector<8x1xf32> to vector<1xf32>
    %126 = vector.shape_cast %125 : vector<1xf32> to vector<1x1xf32>
    %127 = arith.divf %122, %126 : vector<1x1xf32>
    %128 = tpu.iota {dimensions = array<i32: 1>} : vector<1x128xi32>
    %c0_i32 = arith.constant 0 : i32
    %129 = vector.broadcast %c0_i32 : i32 to vector<1x128xi32>
    %130 = arith.cmpi eq, %128, %129 : vector<1x128xi32>
    %cst_48 = arith.constant 0.000000e+00 : f32
    %131 = vector.shape_cast %83 : vector<1x1xf32> to vector<1x1xf32>
    %132 = vector.broadcast %131 : vector<1x1xf32> to vector<1x128xf32>
    %133 = vector.broadcast %cst_48 : f32 to vector<1x128xf32>
    %134 = arith.select %130, %132, %133 : vector<1x128xi1>, vector<1x128xf32>
    %c1_i32 = arith.constant 1 : i32
    %135 = vector.broadcast %c1_i32 : i32 to vector<1x128xi32>
    %136 = arith.cmpi eq, %128, %135 : vector<1x128xi32>
    %cst_49 = arith.constant 0.000000e+00 : f32
    %137 = vector.shape_cast %100 : vector<1x1xf32> to vector<1x1xf32>
    %138 = vector.broadcast %137 : vector<1x1xf32> to vector<1x128xf32>
    %139 = vector.broadcast %cst_49 : f32 to vector<1x128xf32>
    %140 = arith.select %136, %138, %139 : vector<1x128xi1>, vector<1x128xf32>
    %141 = arith.addf %134, %140 : vector<1x128xf32>
    %c2_i32 = arith.constant 2 : i32
    %142 = vector.broadcast %c2_i32 : i32 to vector<1x128xi32>
    %143 = arith.cmpi eq, %128, %142 : vector<1x128xi32>
    %cst_50 = arith.constant 0.000000e+00 : f32
    %144 = vector.shape_cast %36 : vector<1x1xf32> to vector<1x1xf32>
    %145 = vector.broadcast %144 : vector<1x1xf32> to vector<1x128xf32>
    %146 = vector.broadcast %cst_50 : f32 to vector<1x128xf32>
    %147 = arith.select %143, %145, %146 : vector<1x128xi1>, vector<1x128xf32>
    %148 = arith.addf %141, %147 : vector<1x128xf32>
    %c3_i32 = arith.constant 3 : i32
    %149 = vector.broadcast %c3_i32 : i32 to vector<1x128xi32>
    %150 = arith.cmpi eq, %128, %149 : vector<1x128xi32>
    %cst_51 = arith.constant 0.000000e+00 : f32
    %151 = vector.shape_cast %46 : vector<1x1xf32> to vector<1x1xf32>
    %152 = vector.broadcast %151 : vector<1x1xf32> to vector<1x128xf32>
    %153 = vector.broadcast %cst_51 : f32 to vector<1x128xf32>
    %154 = arith.select %150, %152, %153 : vector<1x128xi1>, vector<1x128xf32>
    %155 = arith.addf %148, %154 : vector<1x128xf32>
    %c4_i32 = arith.constant 4 : i32
    %156 = vector.broadcast %c4_i32 : i32 to vector<1x128xi32>
    %157 = arith.cmpi eq, %128, %156 : vector<1x128xi32>
    %cst_52 = arith.constant 0.000000e+00 : f32
    %158 = vector.shape_cast %117 : vector<1x1xf32> to vector<1x1xf32>
    %159 = vector.broadcast %158 : vector<1x1xf32> to vector<1x128xf32>
    %160 = vector.broadcast %cst_52 : f32 to vector<1x128xf32>
    %161 = arith.select %157, %159, %160 : vector<1x128xi1>, vector<1x128xf32>
    %162 = arith.addf %155, %161 : vector<1x128xf32>
    %c5_i32 = arith.constant 5 : i32
    %163 = vector.broadcast %c5_i32 : i32 to vector<1x128xi32>
    %164 = arith.cmpi eq, %128, %163 : vector<1x128xi32>
    %cst_53 = arith.constant 0.000000e+00 : f32
    %165 = vector.shape_cast %127 : vector<1x1xf32> to vector<1x1xf32>
    %166 = vector.broadcast %165 : vector<1x1xf32> to vector<1x128xf32>
    %167 = vector.broadcast %cst_53 : f32 to vector<1x128xf32>
    %168 = arith.select %164, %166, %167 : vector<1x128xi1>, vector<1x128xf32>
    %169 = arith.addf %162, %168 : vector<1x128xf32>
    %c0_54 = arith.constant 0 : index
    %c0_55 = arith.constant 0 : index
    %170 = vector.load %arg4[%c0_54, %c0_55] : memref<1x128xf32, #tpu.memory_space<vmem>>, vector<1x128xf32>
    tpu.vector_store %arg4[%c0_54, %c0_55], %169 {strides = array<i32>} : memref<1x128xf32, #tpu.memory_space<vmem>>, vector<1x128xf32>,
    return
  }
}

</mosaic_0001>

<bundles_post_ra>
// kernel: tpu_custom_call.1
= control target key start
LH: loop header
LB: loop body
LE: loop exit
PB: predicated region body
PF: predicated region fallthrough
CT: control target
= control target key end

     0   :  { %9 = vsyncpa [#allocation3], 0  ;;  %s3295_s0 = inlined_call_operand.hbm [shape: f32[8,2048], index: 0, kind: input, shape index: {}]   ;;  %s3296_s1 = inlined_call_operand.hbm [shape: f32[98,2048], index: 1, kind: input, shape index: {}]   ;;  %s3297_s2 = inlined_call_operand.vmem [shape: s32[8,1], index: 2, kind: input, shape index: {}]   ;;  %s3298_s3 = inlined_call_operand.vmem [shape: s32[1,8], index: 3, kind: input, shape index: {}]   ;;  %s3299_s4 = inlined_call_operand.hbm [shape: f32[1,128], index: 4, kind: output, shape index: {}]  }
   0x1   :  { %10 = vsyncpa [#allocation6], 0 }
   0x2   :  { %11 = vsyncpa [#allocation4], 0  ;;  %s2687_s15 = smov [#allocation2]   ;;  %s2688_s17 = smov [#allocation5]  }
   0x3   :  { %s18_s16 = sshll.u32 %s2687_s15, 4  ;;  %s27_s18 = sshll.u32 %s2688_s17, 4  ;;  %s19_s16 = int_to_ptr.vmem [resolvable:$true] %s18_s16  ;;  %s28_s18 = int_to_ptr.vmem [resolvable:$true] %s27_s18 }
   0x4   :  { %s2629_s19 = scalar_lea.vmem %s19_s16, 2048  ;;  %p2634_p1 = scmp.lt.s32.totalorder %s19_s16, %s19_s16 }
   0x5   :  { %p2630_p0 = scmp.ne.s32.totalorder %s19_s16, %s2629_s19  ;;  %p2635_p2 = scmp.lt.s32.totalorder %s2629_s19, %s2629_s19 }
   0x7   :  { %p2636_p3 = por %p2635_p2, %p2634_p1 }
   0x9   :  { %p2637_p4 = pnand %p2636_p3, %p2630_p0 }
   0xb   :  { %2640 = shalt.err (!%p2637_p4)
}
   0xc   :  { %21 = dma.hbm_to_vmem [thread:$0]  %s3295_s0, 2048, %s19_s16, [#allocation3]  }
   0xd   :  { %s2649_s22 = scalar_lea.vmem %s28_s18, 26624  ;;  %p2654_p6 = scmp.lt.s32.totalorder %s28_s18, %s28_s18 }
   0xe   :  { %p2650_p5 = scmp.ne.s32.totalorder %s28_s18, %s2649_s22  ;;  %p2655_p7 = scmp.lt.s32.totalorder %s2649_s22, %s2649_s22 }
  0x10   :  { %p2656_p8 = por %p2655_p7, %p2654_p6 }
  0x12   :  { %p2657_p9 = pnand %p2656_p8, %p2650_p5 }
  0x14   :  { %2660 = shalt.err (!%p2657_p9)
}
  0x15   :  { %s2689_s23 = smov 2048   ;;  %s2690_s24 = smov 128  }
  0x16   :  { %33 = dma.hbm_to_vmem [thread:$0]  %s3296_s1, 26624, %s28_s18, [#allocation6], %s2689_s23, %s2689_s23, %s2690_s24  }
  0x17   :  { %2681 = dma.done.wait [#allocation3], 2048  }
  0x18   :  { %2682 = vsyncadd [#allocation3], 4294965248 }
  0x19   :  { %2683 = dma.done.wait [#allocation6], 26624  }
  0x1a   :  { %2684 = vsyncadd [#allocation6], 4294940672  ;;  %v220_v0 = vld [vmem:[#allocation5 + $0x500] sm:$0xff]  ;;  %v221_v1 = vld [vmem:[#allocation5 + $0x508] sm:$0xff]  ;;  %vm682_vm0 = vcmask 1041408  }
  0x1b   :  { %v222_v2 = vld [vmem:[#allocation5 + $0x510] sm:$0xff]  ;;  %v223_v3 = vld [vmem:[#allocation5 + $0x518] sm:$0xff]  ;;  %v430_v4 = vmul.f32 %v220_v0, %v220_v0  ;;  %v431_v5 = vmul.f32 %v221_v1, %v221_v1  ;;  %v224_v7 = vld [vmem:[#allocation5 + $0x520] sm:$0xff] }
  0x1c   :  { %v432_v6 = vmul.f32 %v222_v2, %v222_v2  ;;  %v433_v8 = vmul.f32 %v223_v3, %v223_v3  ;;  %v225_v10 = vld [vmem:[#allocation5 + $0x528] sm:$0xff]  ;;  %v434_v11 = vmul.f32 %v224_v7, %v224_v7  ;;  %v252_v13 = vld [vmem:[#allocation5 + $0x600] sm:$0x3]  ;;  %v226_v15 = vld [vmem:[#allocation5 + $0x530] sm:$0xff] }
  0x1d   :  { %v648_v9 = vadd.f32 %v431_v5, %v430_v4  ;;  %v253_v14 = vld [vmem:[#allocation5 + $0x608] sm:$0x3]  ;;  %v254_v16 = vld [vmem:[#allocation5 + $0x610] sm:$0x3]  ;;  %v255_v17 = vld [vmem:[#allocation5 + $0x618] sm:$0x3]  ;;  %v462_v18 = vmul.f32 %v252_v13, %v252_v13  ;;  %v435_v19 = vmul.f32 %v225_v10, %v225_v10  ;;  %v436_v25 = vmul.f32 %v226_v15, %v226_v15 }
  0x1e   :  { %v463_v21 = vmul.f32 %v253_v14, %v253_v14  ;;  %v227_v22 = vld [vmem:[#allocation5 + $0x538] sm:$0xff]  ;;  %v256_v23 = vld [vmem:[#allocation5 + $0x620] sm:$0x3]  ;;  %v464_v24 = vmul.f32 %v254_v16, %v254_v16  ;;  %v465_v27 = vmul.f32 %v255_v17, %v255_v17  ;;  %v257_v29 = vld [vmem:[#allocation5 + $0x628] sm:$0x3] }
  0x1f   :  { %v649_v12 = vadd.f32 %v648_v9, %v432_v6  ;;  %v228_v28 = vld [vmem:[#allocation5 + $0x540] sm:$0xff]  ;;  %v683_v30 = vsel %vm682_vm0, %v462_v18, 0.0  ;;  %v437_v31 = vmul.f32 %v227_v22, %v227_v22  ;;  %v466_v33 = vmul.f32 %v256_v23, %v256_v23  ;;  %v229_v35 = vld [vmem:[#allocation5 + $0x548] sm:$0xff]  ;;  %v258_v36 = vld [vmem:[#allocation5 + $0x630] sm:$0x3] }
  0x20   :  { %v684_v34 = vsel %vm682_vm0, %v463_v21, 0.0  ;;  %v686_v38 = vsel %vm682_vm0, %v464_v24, 0.0  ;;  %v230_v39 = vld [vmem:[#allocation5 + $0x550] sm:$0xff]  ;;  %v231_v40 = vld [vmem:[#allocation5 + $0x558] sm:$0xff]  ;;  %v232_v41 = vld [vmem:[#allocation5 + $0x560] sm:$0xff]  ;;  %v438_v42 = vmul.f32 %v228_v28, %v228_v28  ;;  %v467_v44 = vmul.f32 %v257_v29, %v257_v29 }
  0x21   :  { %v650_v20 = vadd.f32 %v649_v12, %v433_v8  ;;  %v685_v37 = vadd.f32 %v684_v34, %v683_v30  ;;  %v688_v45 = vsel %vm682_vm0, %v465_v27, 0.0  ;;  %v233_v46 = vld [vmem:[#allocation5 + $0x568] sm:$0xff]  ;;  %v259_v47 = vld [vmem:[#allocation5 + $0x638] sm:$0x3]  ;;  %v234_v49 = vld [vmem:[#allocation5 + $0x570] sm:$0xff]  ;;  %v439_v50 = vmul.f32 %v229_v35, %v229_v35 }
  0x22   :  { %v468_v52 = vmul.f32 %v258_v36, %v258_v36  ;;  %v690_v53 = vsel %vm682_vm0, %v466_v33, 0.0  ;;  %v204_v54 = vld [vmem:[#allocation5 + $0x480] sm:$0xff]  ;;  %v205_v55 = vld [vmem:[#allocation5 + $0x488] sm:$0xff]  ;;  %v235_v56 = vld [vmem:[#allocation5 + $0x578] sm:$0xff]  ;;  %v440_v57 = vmul.f32 %v230_v39, %v230_v39  ;;  %v441_v58 = vmul.f32 %v231_v40, %v231_v40 }
  0x23   :  { %v651_v26 = vadd.f32 %v650_v20, %v434_v11  ;;  %v687_v48 = vadd.f32 %v686_v38, %v685_v37  ;;  %v442_v59 = vmul.f32 %v232_v41, %v232_v41  ;;  %v260_v60 = vld [vmem:[#allocation5 + $0x640] sm:$0x3]  ;;  %v443_v62 = vmul.f32 %v233_v46, %v233_v46  ;;  %v261_v0 = vld [vmem:[#allocation5 + $0x648] sm:$0x3]  ;;  %v262_v1 = vld [vmem:[#allocation5 + $0x650] sm:$0x3] }
  0x24   :  { %v469_v2 = vmul.f32 %v259_v47, %v259_v47  ;;  %v692_v3 = vsel %vm682_vm0, %v467_v44, 0.0  ;;  %v206_v4 = vld [vmem:[#allocation5 + $0x490] sm:$0xff]  ;;  %v444_v5 = vmul.f32 %v234_v49, %v234_v49  ;;  %v263_v6 = vld [vmem:[#allocation5 + $0x658] sm:$0x3]  ;;  %v264_v7 = vld [vmem:[#allocation5 + $0x660] sm:$0x3]  ;;  %v414_v9 = vmul.f32 %v204_v54, %v204_v54 }
  0x25   :  { %v652_v32 = vadd.f32 %v651_v26, %v435_v19  ;;  %v689_v61 = vadd.f32 %v688_v45, %v687_v48  ;;  %v415_v10 = vmul.f32 %v205_v55, %v205_v55  ;;  %v2731_v11 = vmul.f32 %v235_v56, %v235_v56  ;;  %v265_v13 = vld [vmem:[#allocation5 + $0x668] sm:$0x3]  ;;  %v207_v16 = vld [vmem:[#allocation5 + $0x498] sm:$0xff]  ;;  %v266_v17 = vld [vmem:[#allocation5 + $0x670] sm:$0x3] }
  0x26   :  { %v470_v14 = vmul.f32 %v260_v60, %v260_v60  ;;  %v694_v15 = vsel %vm682_vm0, %v468_v52, 0.0  ;;  %v471_v18 = vmul.f32 %v261_v0, %v261_v0  ;;  %v472_v19 = vmul.f32 %v262_v1, %v262_v1  ;;  %v208_v21 = vld [vmem:[#allocation5 + $0x4a0] sm:$0xff]  ;;  %v237_v28 = vld [vmem:[#allocation5 + $0x588] sm:$0xff]  ;;  %v267_v29 = vld [vmem:[#allocation5 + $0x678] sm:$0x3] }
  0x27   :  { %v653_v43 = vadd.f32 %v652_v32, %v436_v25  ;;  %v691_v8 = vadd.f32 %v690_v53, %v689_v61  ;;  %v416_v22 = vmul.f32 %v206_v4, %v206_v4  ;;  %v473_v24 = vmul.f32 %v263_v6, %v263_v6  ;;  %v236_v27 = vld [vmem:[#allocation5 + $0x580] sm:$0xff]  ;;  %v209_v37 = vld [vmem:[#allocation5 + $0x4a8] sm:$0xff]  ;;  %v238_v39 = vld [vmem:[#allocation5 + $0x590] sm:$0xff] }
  0x28   :  { %v474_v25 = vmul.f32 %v264_v7, %v264_v7  ;;  %v696_v26 = vsel %vm682_vm0, %v469_v2, 0.0  ;;  %v475_v30 = vmul.f32 %v265_v13, %v265_v13  ;;  %v417_v32 = vmul.f32 %v207_v16, %v207_v16  ;;  %v210_v41 = vld [vmem:[#allocation5 + $0x4b0] sm:$0xff]  ;;  %v239_v49 = vld [vmem:[#allocation5 + $0x598] sm:$0xff]  ;;  %v240_v60 = vld [vmem:[#allocation5 + $0x5a0] sm:$0xff] }
  0x29   :  { %v654_v51 = vadd.f32 %v653_v43, %v437_v31  ;;  %v693_v20 = vadd.f32 %v692_v3, %v691_v8  ;;  %v631_v33 = vadd.f32 %v415_v10, %v414_v9  ;;  %v476_v35 = vmul.f32 %v266_v17, %v266_v17  ;;  %v172_v2 = vld [vmem:[#allocation5 + $0x380] sm:$0xff]  ;;  %v173_v3 = vld [vmem:[#allocation5 + $0x388] sm:$0xff]  ;;  %v174_v16 = vld [vmem:[#allocation5 + $0x390] sm:$0xff] }
  0x2a   :  { %v698_v36 = vsel %vm682_vm0, %v470_v14, 0.0  ;;  %v418_v38 = vmul.f32 %v208_v21, %v208_v21  ;;  %v446_v43 = vmul.f32 %v236_v27, %v236_v27  ;;  %v447_v44 = vmul.f32 %v237_v28, %v237_v28  ;;  %v213_v10 = vld [vmem:[#allocation5 + $0x4c8] sm:$0xff]  ;;  %v175_v27 = vld [vmem:[#allocation5 + $0x398] sm:$0xff] }
  0x2b   :  { %v655_v63 = vadd.f32 %v654_v51, %v438_v42  ;;  %v695_v31 = vadd.f32 %v694_v15, %v693_v20  ;;  %v632_v42 = vadd.f32 %v631_v33, %v416_v22  ;;  %v477_v46 = vmul.f32 %v267_v29, %v267_v29  ;;  %v211_v51 = vld [vmem:[#allocation5 + $0x4b8] sm:$0xff] }
  0x2c   :  { %v700_v47 = vsel %vm682_vm0, %v471_v18, 0.0  ;;  %v702_v48 = vsel %vm682_vm0, %v472_v19, 0.0  ;;  %v419_v52 = vmul.f32 %v209_v37, %v209_v37  ;;  %v448_v54 = vmul.f32 %v238_v39, %v238_v39  ;;  %v242_v19 = vld [vmem:[#allocation5 + $0x5b0] sm:$0xff]  ;;  %v215_v22 = vld [vmem:[#allocation5 + $0x4d8] sm:$0xff] }
  0x2d   :  { %v656_v12 = vadd.f32 %v655_v63, %v439_v50  ;;  %v697_v40 = vadd.f32 %v696_v26, %v695_v31  ;;  %v633_v53 = vadd.f32 %v632_v42, %v417_v32  ;;  %v704_v56 = vsel %vm682_vm0, %v473_v24, 0.0  ;;  %v243_v31 = vld [vmem:[#allocation5 + $0x5b8] sm:$0xff] }
  0x2e   :  { %v449_v0 = vmul.f32 %v239_v49, %v239_v49  ;;  %v665_v1 = vadd.f32 %v447_v44, %v446_v43  ;;  %v708_v6 = vsel %vm682_vm0, %v475_v30, 0.0  ;;  %v710_v7 = vsel %vm682_vm0, %v476_v35, 0.0  ;;  %v188_v49 = vld [vmem:[#allocation5 + $0x400] sm:$0xff] }
  0x2f   :  { %v657_v23 = vadd.f32 %v656_v12, %v440_v57  ;;  %v699_v50 = vadd.f32 %v698_v36, %v697_v40  ;;  %v706_v57 = vsel %vm682_vm0, %v474_v25, 0.0  ;;  %v634_v63 = vadd.f32 %v633_v53, %v418_v38  ;;  %v214_v12 = vld [vmem:[#allocation5 + $0x4d0] sm:$0xff]  ;;  %v176_v38 = vld [vmem:[#allocation5 + $0x3a0] sm:$0xff]  ;;  %v245_v53 = vld [vmem:[#allocation5 + $0x5c8] sm:$0xff] }
  0x30   :  { %v421_v8 = vmul.f32 %v211_v51, %v211_v51  ;;  %v450_v14 = vmul.f32 %v240_v60, %v240_v60  ;;  %v666_v15 = vadd.f32 %v665_v1, %v448_v54  ;;  %v382_v20 = vmul.f32 %v172_v2, %v172_v2  ;;  %v247_v1 = vld [vmem:[#allocation5 + $0x5d8] sm:$0xff] }
  0x31   :  { %v658_v34 = vadd.f32 %v657_v23, %v441_v58  ;;  %v420_v58 = vmul.f32 %v210_v41, %v210_v41  ;;  %v701_v61 = vadd.f32 %v700_v47, %v699_v50  ;;  %v635_v13 = vadd.f32 %v634_v63, %v419_v52  ;;  %v216_v23 = vld [vmem:[#allocation5 + $0x4e0] sm:$0xff]  ;;  %v189_v50 = vld [vmem:[#allocation5 + $0x408] sm:$0xff]  ;;  %v190_v63 = vld [vmem:[#allocation5 + $0x410] sm:$0xff] }
  0x32   :  { %v383_v21 = vmul.f32 %v173_v3, %v173_v3  ;;  %v667_v26 = vadd.f32 %v666_v15, %v449_v0  ;;  %v712_v28 = vsel %vm682_vm0, %v477_v46, 0.0  ;;  %v423_v29 = vmul.f32 %v213_v10, %v213_v10  ;;  %v244_v41 = vld [vmem:[#allocation5 + $0x5c0] sm:$0xff]  ;;  %v246_v0 = vld [vmem:[#allocation5 + $0x5d0] sm:$0xff]  ;;  %v249_v15 = vld [vmem:[#allocation5 + $0x5e8] sm:$0xff] }
  0x33   :  { %v659_v45 = vadd.f32 %v658_v34, %v442_v59  ;;  %v212_v59 = vld [vmem:[#allocation5 + $0x4c0] sm:$0xff]  ;;  %v703_v9 = vadd.f32 %v702_v48, %v701_v61  ;;  %v636_v24 = vadd.f32 %v635_v13, %v420_v58  ;;  %v424_v30 = vmul.f32 %v214_v12, %v214_v12  ;;  %v218_v34 = vld [vmem:[#allocation5 + $0x4f0] sm:$0xff]  ;;  %v177_v48 = vld [vmem:[#allocation5 + $0x3a8] sm:$0xff] }
  0x34   :  { %v422_v18 = vmul.f32 %v212_v59, %v212_v59  ;;  %v384_v32 = vmul.f32 %v174_v16, %v174_v16  ;;  %v452_v36 = vmul.f32 %v242_v19, %v242_v19  ;;  %v668_v37 = vadd.f32 %v667_v26, %v450_v14  ;;  %v178_v59 = vld [vmem:[#allocation5 + $0x3b0] sm:$0xff]  ;;  %v179_v12 = vld [vmem:[#allocation5 + $0x3b8] sm:$0xff] }
  0x35   :  { %v660_v55 = vadd.f32 %v659_v45, %v443_v62  ;;  %v241_v62 = vld [vmem:[#allocation5 + $0x5a8] sm:$0xff]  ;;  %v637_v35 = vadd.f32 %v636_v24, %v421_v8  ;;  %v425_v39 = vmul.f32 %v215_v22, %v215_v22  ;;  %v426_v40 = vmul.f32 %v216_v23, %v216_v23  ;;  %v191_v13 = vld [vmem:[#allocation5 + $0x418] sm:$0xff]  ;;  %v180_v22 = vld [vmem:[#allocation5 + $0x3c0] sm:$0xff] }
  0x36   :  { %v451_v25 = vmul.f32 %v241_v62, %v241_v62  ;;  %v385_v42 = vmul.f32 %v175_v27, %v175_v27  ;;  %v597_v43 = vadd.f32 %v383_v21, %v382_v20  ;;  %v453_v47 = vmul.f32 %v243_v31, %v243_v31  ;;  %v192_v23 = vld [vmem:[#allocation5 + $0x420] sm:$0xff]  ;;  %v250_v24 = vld [vmem:[#allocation5 + $0x5f0] sm:$0xff] }
  0x37   :  { %v661_v4 = vadd.f32 %v660_v55, %v444_v5  ;;  %v705_v5 = vadd.f32 %v704_v56, %v703_v9  ;;  %v638_v45 = vadd.f32 %v637_v35, %v422_v18  ;;  %v2744_v52 = vmul.f32 %v218_v34, %v218_v34  ;;  %v193_v34 = vld [vmem:[#allocation5 + $0x428] sm:$0xff] }
  0x38   :  { %v669_v46 = vadd.f32 %v668_v37, %v451_v25  ;;  %v386_v54 = vmul.f32 %v176_v38, %v176_v38  ;;  %v598_v55 = vadd.f32 %v597_v43, %v384_v32  ;;  %v454_v60 = vmul.f32 %v244_v41, %v244_v41  ;;  %v251_v25 = vld [vmem:[#allocation5 + $0x5f8] sm:$0xff]  ;;  %v157_v41 = vld [vmem:[#allocation5 + $0x308] sm:$0xff] }
  0x39   :  { %v662_v17 = vadd.f32 %v661_v4, %v2731_v11  ;;  %v707_v33 = vadd.f32 %v706_v57, %v705_v5  ;;  %v217_v11 = vld [vmem:[#allocation5 + $0x4e8] sm:$0xff]  ;;  %v219_v57 = vld [vmem:[#allocation5 + $0x4f8] sm:$0xff]  ;;  %v639_v58 = vadd.f32 %v638_v45, %v423_v29  ;;  %v387_v2 = vmul.f32 %v177_v48, %v177_v48 }
  0x3a   :  { %v427_v51 = vmul.f32 %v217_v11, %v217_v11  ;;  %v670_v61 = vadd.f32 %v669_v46, %v452_v36  ;;  %v599_v3 = vadd.f32 %v598_v55, %v385_v42  ;;  %v398_v4 = vmul.f32 %v188_v49, %v188_v49  ;;  %v181_v11 = vld [vmem:[#allocation5 + $0x3c8] sm:$0xff]  ;;  %v194_v46 = vld [vmem:[#allocation5 + $0x430] sm:$0xff]  ;;  %v183_v48 = vld [vmem:[#allocation5 + $0x3d8] sm:$0xff] }
  0x3b   :  { %663 = vadd.xlane.f32.xlu1 %v662_v17  ;;  %v709_v44 = vadd.f32 %v708_v6, %v707_v33  ;;  %v399_v6 = vmul.f32 %v189_v50, %v189_v50  ;;  %v640_v62 = vadd.f32 %v639_v58, %v424_v30  ;;  %v455_v9 = vmul.f32 %v245_v53, %v245_v53  ;;  %v195_v58 = vld [vmem:[#allocation5 + $0x438] sm:$0xff] }
  0x3c   :  { %v671_v10 = vadd.f32 %v670_v61, %v453_v47  ;;  %v429_v14 = vmul.f32 %v219_v57, %v219_v57  ;;  %v388_v16 = vmul.f32 %v178_v59, %v178_v59  ;;  %v600_v17 = vadd.f32 %v599_v3, %v386_v54  ;;  %v182_v47 = vld [vmem:[#allocation5 + $0x3d0] sm:$0xff]  ;;  %v184_v57 = vld [vmem:[#allocation5 + $0x3e0] sm:$0xff]  ;;  %v185_v59 = vld [vmem:[#allocation5 + $0x3e8] sm:$0xff] }
  0x3d   :  { %v711_v56 = vadd.f32 %v710_v7, %v709_v44  ;;  %v248_v7 = vld [vmem:[#allocation5 + $0x5e0] sm:$0xff]  ;;  %v400_v18 = vmul.f32 %v190_v63, %v190_v63  ;;  %v641_v19 = vadd.f32 %v640_v62, %v425_v39  ;;  %v456_v20 = vmul.f32 %v246_v0, %v246_v0  ;;  %v158_v54 = vld [vmem:[#allocation5 + $0x310] sm:$0xff] }
  0x3e   :  { %v457_v21 = vmul.f32 %v247_v1, %v247_v1  ;;  %v672_v5 = vadd.f32 %v671_v10, %v454_v60  ;;  %v389_v26 = vmul.f32 %v179_v12, %v179_v12  ;;  %v601_v27 = vadd.f32 %v600_v17, %v387_v2  ;;  %v156_v39 = vld [vmem:[#allocation5 + $0x300] sm:$0xff]  ;;  %v159_v2 = vld [vmem:[#allocation5 + $0x318] sm:$0xff] }
  0x3f   :  { %v713_v8 = vadd.f32 %v712_v28, %v711_v56  ;;  %v401_v28 = vmul.f32 %v191_v13, %v191_v13  ;;  %v614_v29 = vadd.f32 %v399_v6, %v398_v4  ;;  %v642_v30 = vadd.f32 %v641_v19, %v426_v40  ;;  %v186_v6 = vld [vmem:[#allocation5 + $0x3f0] sm:$0xff]  ;;  %v196_v62 = vld [vmem:[#allocation5 + $0x440] sm:$0xff] }
  0x40   :  { %v458_v31 = vmul.f32 %v248_v7, %v248_v7  ;;  %v459_v32 = vmul.f32 %v249_v15, %v249_v15  ;;  %v673_v33 = vadd.f32 %v672_v5, %v455_v9  ;;  %v390_v35 = vmul.f32 %v180_v22, %v180_v22  ;;  %v160_v15 = vld [vmem:[#allocation5 + $0x320] sm:$0xff]  ;;  %v187_v5 = vld [vmem:[#allocation5 + $0x3f8] sm:$0xff] }
  0x41   :  { %714 = vadd.xlane.f32.xlu0 %v713_v8  ;;  %v602_v36 = vadd.f32 %v601_v27, %v388_v16  ;;  %v402_v37 = vmul.f32 %v192_v23, %v192_v23  ;;  %v615_v38 = vadd.f32 %v614_v29, %v400_v18  ;;  %v643_v42 = vadd.f32 %v642_v30, %v427_v51  ;;  %v198_v27 = vld [vmem:[#allocation5 + $0x450] sm:$0xff] }
  0x42   :  { %v460_v43 = vmul.f32 %v250_v24, %v250_v24  ;;  %v461_v44 = vmul.f32 %v251_v25, %v251_v25  ;;  %v674_v45 = vadd.f32 %v673_v33, %v456_v20  ;;  %v391_v49 = vmul.f32 %v181_v11, %v181_v11  ;;  %v140_v20 = vld [vmem:[#allocation5 + $0x280] sm:$0xff]  ;;  %v161_v25 = vld [vmem:[#allocation5 + $0x328] sm:$0xff]  ;;  %v199_v11 = vld [vmem:[#allocation5 + $0x458] sm:$0xff] }
  0x43   :  { %v603_v40 = vadd.f32 %v602_v36, %v389_v26  ;;  %v403_v50 = vmul.f32 %v193_v34, %v193_v34  ;;  %v616_v53 = vadd.f32 %v615_v38, %v401_v28  ;;  %v644_v55 = vadd.f32 %v643_v42, %v2744_v52  ;;  %v197_v52 = vld [vmem:[#allocation5 + $0x448] sm:$0xff] }
  0x44   :  { %v675_v56 = vadd.f32 %v674_v45, %v457_v21  ;;  %v366_v60 = vmul.f32 %v156_v39, %v156_v39  ;;  %v367_v61 = vmul.f32 %v157_v41, %v157_v41  ;;  %v392_v51 = vmul.f32 %v182_v47, %v182_v47  ;;  %v141_v21 = vld [vmem:[#allocation5 + $0x288] sm:$0xff]  ;;  %v2747_v45 = vld [vmem:[#allocation5 + $0x298] sm:$0xff] }
  0x45   :  { %v604_v63 = vadd.f32 %v603_v40, %v390_v35  ;;  %v404_v0 = vmul.f32 %v194_v46, %v194_v46  ;;  %v617_v1 = vadd.f32 %v616_v53, %v402_v37  ;;  %v645_v3 = vadd.f32 %v644_v55, %v429_v14  ;;  %v162_v35 = vld [vmem:[#allocation5 + $0x330] sm:$0xff]  ;;  %v163_v40 = vld [vmem:[#allocation5 + $0x338] sm:$0xff] }
  0x46   :  { %v676_v4 = vadd.f32 %v675_v56, %v458_v31  ;;  %v393_v8 = vmul.f32 %v183_v48, %v183_v48  ;;  %v368_v9 = vmul.f32 %v158_v54, %v158_v54  ;;  %v394_v10 = vmul.f32 %v184_v57, %v184_v57  ;;  %v142_v31 = vld [vmem:[#allocation5 + $0x290] sm:$0xff]  ;;  %v144_v57 = vld [vmem:[#allocation5 + $0x2a0] sm:$0xff] }
  0x47   :  { %v605_v12 = vadd.f32 %v604_v63, %v391_v49  ;;  %v405_v13 = vmul.f32 %v195_v58, %v195_v58  ;;  %v618_v7 = vadd.f32 %v617_v1, %v403_v50  ;;  %646 = vadd.xlane.f32.xlu1 %v645_v3  ;;  %v395_v17 = vmul.f32 %v185_v59, %v185_v59  ;;  %v202_v46 = vld [vmem:[#allocation5 + $0x470] sm:$0xff]  ;;  %v124_v63 = vld [vmem:[#allocation5 + $0x200] sm:$0xff] }
  0x48   :  { %v677_v16 = vadd.f32 %v676_v4, %v459_v32  ;;  %v369_v18 = vmul.f32 %v159_v2, %v159_v2  ;;  %v580_v19 = vadd.f32 %v367_v61, %v366_v60  ;;  %v396_v14 = vmul.f32 %v186_v6, %v186_v6  ;;  %v200_v32 = vld [vmem:[#allocation5 + $0x460] sm:$0xff]  ;;  %v145_v61 = vld [vmem:[#allocation5 + $0x2a8] sm:$0xff] }
  0x49   :  { %v606_v22 = vadd.f32 %v605_v12, %v392_v51  ;;  %v406_v23 = vmul.f32 %v196_v62, %v196_v62  ;;  %v619_v24 = vadd.f32 %v618_v7, %v404_v0  ;;  %v407_v28 = vmul.f32 %v197_v52, %v197_v52  ;;  %v164_v60 = vld [vmem:[#allocation5 + $0x340] sm:$0xff]  ;;  %v2751_v4 = vld [vmem:[#allocation5 + $0x208] sm:$0xff] }
  0x4a   :  { %v678_v26 = vadd.f32 %v677_v16, %v460_v43  ;;  %v370_v29 = vmul.f32 %v160_v15, %v160_v15  ;;  %v581_v30 = vadd.f32 %v580_v19, %v368_v9  ;;  %v350_v36 = vmul.f32 %v140_v20, %v140_v20  ;;  %v201_v43 = vld [vmem:[#allocation5 + $0x468] sm:$0xff]  ;;  %v146_v15 = vld [vmem:[#allocation5 + $0x2b0] sm:$0xff] }
  0x4b   :  { %v607_v33 = vadd.f32 %v606_v22, %v393_v8  ;;  %v620_v34 = vadd.f32 %v619_v24, %v405_v13  ;;  %v351_v37 = vmul.f32 %v141_v21, %v141_v21  ;;  %v397_v39 = vmul.f32 %v187_v5, %v187_v5  ;;  %v203_v8 = vld [vmem:[#allocation5 + $0x478] sm:$0xff]  ;;  %v165_v9 = vld [vmem:[#allocation5 + $0x348] sm:$0xff]  ;;  %v168_v5 = vld [vmem:[#allocation5 + $0x360] sm:$0xff] }
  0x4c   :  { %v679_v38 = vadd.f32 %v678_v26, %v461_v44  ;;  %v371_v41 = vmul.f32 %v161_v25, %v161_v25  ;;  %v582_v42 = vadd.f32 %v581_v30, %v369_v18  ;;  %v408_v48 = vmul.f32 %v198_v27, %v198_v27  ;;  %v167_v21 = vld [vmem:[#allocation5 + $0x358] sm:$0xff]  ;;  %v169_v30 = vld [vmem:[#allocation5 + $0x368] sm:$0xff] }
  0x4d   :  { %v608_v47 = vadd.f32 %v607_v33, %v394_v10  ;;  %v621_v49 = vadd.f32 %v620_v34, %v406_v23  ;;  %v352_v50 = vmul.f32 %v142_v31, %v142_v31  ;;  %v409_v53 = vmul.f32 %v199_v11, %v199_v11  ;;  %v166_v10 = vld [vmem:[#allocation5 + $0x350] sm:$0xff]  ;;  %v147_v22 = vld [vmem:[#allocation5 + $0x2b8] sm:$0xff]  ;;  %v148_v33 = vld [vmem:[#allocation5 + $0x2c0] sm:$0xff] }
  0x4e   :  { %680 = vadd.xlane.f32.xlu0 %v679_v38  ;;  %v410_v54 = vmul.f32 %v200_v32, %v200_v32  ;;  %v372_v55 = vmul.f32 %v162_v35, %v162_v35  ;;  %v583_v56 = vadd.f32 %v582_v42, %v370_v29  ;;  %v353_v59 = vmul.f32 %v2747_v45, %v2747_v45  ;;  %v170_v31 = vld [vmem:[#allocation5 + $0x370] sm:$0xff]  ;;  %v149_v42 = vld [vmem:[#allocation5 + $0x2c8] sm:$0xff] }
  0x4f   :  { %v609_v58 = vadd.f32 %v608_v47, %v395_v17  ;;  %v622_v44 = vadd.f32 %v621_v49, %v407_v28  ;;  %v563_v51 = vadd.f32 %v351_v37, %v350_v36  ;;  %v411_v0 = vmul.f32 %v201_v43, %v201_v43  ;;  %v2753_v17 = vld [vmem:[#allocation5 + $0x210] sm:$0xff]  ;;  %v2757_v28 = vld [vmem:[#allocation5 + $0x218] sm:$0xff]  ;;  %v2765_v49 = vld [vmem:[#allocation5 + $0x188] sm:$0xff] }
  0x50   :  { %v412_v1 = vmul.f32 %v202_v46, %v202_v46  ;;  %v373_v2 = vmul.f32 %v163_v40, %v163_v40  ;;  %v584_v3 = vadd.f32 %v583_v56, %v371_v41  ;;  %v354_v12 = vmul.f32 %v144_v57, %v144_v57  ;;  %v171_v57 = vld [vmem:[#allocation5 + $0x378] sm:$0xff] }
  0x51   :  { %v610_v6 = vadd.f32 %v609_v58, %v396_v14  ;;  %v623_v62 = vadd.f32 %v622_v44, %v408_v48  ;;  %v564_v52 = vadd.f32 %v563_v51, %v352_v50  ;;  %v374_v13 = vmul.f32 %v164_v60, %v164_v60  ;;  %v2763_v48 = vld [vmem:[#allocation5 + $0x180] sm:$0xff]  ;;  %v150_v58 = vld [vmem:[#allocation5 + $0x2d0] sm:$0xff] }
  0x52   :  { %v585_v7 = vadd.f32 %v584_v3, %v372_v55  ;;  %v355_v16 = vmul.f32 %v145_v61, %v145_v61  ;;  %v334_v18 = vmul.f32 %v124_v63, %v124_v63  ;;  %v335_v14 = vmul.f32 %v2751_v4, %v2751_v4  ;;  %v129_v55 = vld [vmem:[#allocation5 + $0x228] sm:$0xff]  ;;  %v151_v63 = vld [vmem:[#allocation5 + $0x2d8] sm:$0xff] }
  0x53   :  { %v611_v19 = vadd.f32 %v610_v6, %v397_v39  ;;  %v624_v20 = vadd.f32 %v623_v62, %v409_v53  ;;  %v565_v23 = vadd.f32 %v564_v52, %v353_v59  ;;  %v413_v24 = vmul.f32 %v203_v8, %v203_v8  ;;  %v128_v39 = vld [vmem:[#allocation5 + $0x220] sm:$0xff]  ;;  %v2767_v59 = vld [vmem:[#allocation5 + $0x190] sm:$0xff] }
  0x54   :  { %v375_v25 = vmul.f32 %v165_v9, %v165_v9  ;;  %v376_v26 = vmul.f32 %v166_v10, %v166_v10  ;;  %v586_v27 = vadd.f32 %v585_v7, %v373_v2  ;;  %v356_v11 = vmul.f32 %v146_v15, %v146_v15  ;;  %v130_v2 = vld [vmem:[#allocation5 + $0x230] sm:$0xff]  ;;  %v152_v62 = vld [vmem:[#allocation5 + $0x2e0] sm:$0xff]  ;;  %v153_v7 = vld [vmem:[#allocation5 + $0x2e8] sm:$0xff] }
  0x55   :  { %612 = vadd.xlane.f32.xlu1 %v611_v19  ;;  %v625_v29 = vadd.f32 %v624_v20, %v410_v54  ;;  %v566_v32 = vadd.f32 %v565_v23, %v354_v12  ;;  %v336_v34 = vmul.f32 %v2753_v17, %v2753_v17  ;;  %v377_v35 = vmul.f32 %v167_v21, %v167_v21  ;;  %v2773_v12 = vld [vmem:[#allocation5 + $0x198] sm:$0xff]  ;;  %v154_v19 = vld [vmem:[#allocation5 + $0x2f0] sm:$0xff]  ;;  %v112_v23 = vld [vmem:[#allocation5 + $0x1a0] sm:$0xff] }
  0x56   :  { %v378_v36 = vmul.f32 %v168_v5, %v168_v5  ;;  %v587_v37 = vadd.f32 %v586_v27, %v374_v13  ;;  %v357_v38 = vmul.f32 %v147_v22, %v147_v22  ;;  %v337_v43 = vmul.f32 %v2757_v28, %v2757_v28 }
  0x57   :  { %v626_v41 = vadd.f32 %v625_v29, %v411_v0  ;;  %v567_v47 = vadd.f32 %v566_v32, %v355_v16  ;;  %v546_v46 = vadd.f32 %v335_v14, %v334_v18  ;;  %v379_v40 = vmul.f32 %v169_v30, %v169_v30  ;;  %v131_v16 = vld [vmem:[#allocation5 + $0x238] sm:$0xff]  ;;  %v2779_v32 = vld [vmem:[#allocation5 + $0x100] sm:$0xff] }
  0x58   :  { %v380_v50 = vmul.f32 %v170_v31, %v170_v31  ;;  %v588_v53 = vadd.f32 %v587_v37, %v375_v25  ;;  %v358_v54 = vmul.f32 %v148_v33, %v148_v33  ;;  %v338_v60 = vmul.f32 %v128_v39, %v128_v39  ;;  %v132_v25 = vld [vmem:[#allocation5 + $0x240] sm:$0xff]  ;;  %v155_v37 = vld [vmem:[#allocation5 + $0x2f8] sm:$0xff]  ;;  %v133_v39 = vld [vmem:[#allocation5 + $0x248] sm:$0xff] }
  0x59   :  { %v627_v56 = vadd.f32 %v626_v41, %v412_v1  ;;  %v568_v44 = vadd.f32 %v567_v47, %v356_v11  ;;  %v547_v61 = vadd.f32 %v546_v46, %v336_v34  ;;  %v359_v0 = vmul.f32 %v149_v42, %v149_v42  ;;  %v2781_v34 = vld [vmem:[#allocation5 + $0x108] sm:$0xff]  ;;  %v114_v46 = vld [vmem:[#allocation5 + $0x1b0] sm:$0xff] }
  0x5a   :  { %v589_v51 = vadd.f32 %v588_v53, %v376_v26  ;;  %v318_v3 = vmul.f32 %v2763_v48, %v2763_v48  ;;  %v319_v6 = vmul.f32 %v2765_v49, %v2765_v49  ;;  %v339_v9 = vmul.f32 %v129_v55, %v129_v55  ;;  %v113_v26 = vld [vmem:[#allocation5 + $0x1a8] sm:$0xff] }
  0x5b   :  { %v628_v8 = vadd.f32 %v627_v56, %v413_v24  ;;  %v569_v1 = vadd.f32 %v568_v44, %v357_v38  ;;  %v548_v10 = vadd.f32 %v547_v61, %v337_v43  ;;  %v381_v52 = vmul.f32 %v171_v57, %v171_v57  ;;  %v134_v56 = vld [vmem:[#allocation5 + $0x250] sm:$0xff]  ;;  %v135_v57 = vld [vmem:[#allocation5 + $0x258] sm:$0xff] }
  0x5c   :  { %v590_v13 = vadd.f32 %v589_v51, %v377_v35  ;;  %v360_v15 = vmul.f32 %v150_v58, %v150_v58  ;;  %v320_v18 = vmul.f32 %v2767_v59, %v2767_v59  ;;  %v361_v20 = vmul.f32 %v151_v63, %v151_v63 }
  0x5d   :  { %629 = vadd.xlane.f32.xlu0 %v628_v8  ;;  %v570_v21 = vadd.f32 %v569_v1, %v358_v54  ;;  %v340_v5 = vmul.f32 %v130_v2, %v130_v2  ;;  %v549_v22 = vadd.f32 %v548_v10, %v338_v60  ;;  %v362_v24 = vmul.f32 %v152_v62, %v152_v62  ;;  %v2783_v54 = vld [vmem:[#allocation5 + $0x110] sm:$0xff]  ;;  %v2789_v2 = vld [vmem:[#allocation5 + $0x118] sm:$0xff]  ;;  %v137_v8 = vld [vmem:[#allocation5 + $0x268] sm:$0xff] }
  0x5e   :  { %v591_v14 = vadd.f32 %v590_v13, %v378_v36  ;;  %v321_v27 = vmul.f32 %v2773_v12, %v2773_v12  ;;  %v529_v29 = vadd.f32 %v319_v6, %v318_v3  ;;  %v363_v30 = vmul.f32 %v153_v7, %v153_v7  ;;  %v136_v6 = vld [vmem:[#allocation5 + $0x260] sm:$0xff] }
  0x5f   :  { %v571_v31 = vadd.f32 %v570_v21, %v359_v0  ;;  %v341_v33 = vmul.f32 %v131_v16, %v131_v16  ;;  %v550_v11 = vadd.f32 %v549_v22, %v339_v9  ;;  %v364_v38 = vmul.f32 %v154_v19, %v154_v19  ;;  %v115_v0 = vld [vmem:[#allocation5 + $0x1b8] sm:$0xff]  ;;  %v96_v16 = vld [vmem:[#allocation5 + $0x120] sm:$0xff]  ;;  %v97_v21 = vld [vmem:[#allocation5 + $0x128] sm:$0xff] }
  0x60   :  { %v592_v35 = vadd.f32 %v591_v14, %v379_v40  ;;  %v322_v36 = vmul.f32 %v112_v23, %v112_v23  ;;  %v530_v41 = vadd.f32 %v529_v29, %v320_v18  ;;  %v342_v47 = vmul.f32 %v132_v25, %v132_v25  ;;  %v117_v18 = vld [vmem:[#allocation5 + $0x1c8] sm:$0xff]  ;;  %v118_v29 = vld [vmem:[#allocation5 + $0x1d0] sm:$0xff] }
  0x61   :  { %v572_v42 = vadd.f32 %v571_v31, %v360_v15  ;;  %v551_v43 = vadd.f32 %v550_v11, %v340_v5  ;;  %v323_v53 = vmul.f32 %v113_v26, %v113_v26  ;;  %v302_v44 = vmul.f32 %v2779_v32, %v2779_v32  ;;  %v116_v15 = vld [vmem:[#allocation5 + $0x1c0] sm:$0xff] }
  0x62   :  { %v593_v55 = vadd.f32 %v592_v35, %v380_v50  ;;  %v531_v58 = vadd.f32 %v530_v41, %v321_v27  ;;  %v303_v40 = vmul.f32 %v2781_v34, %v2781_v34  ;;  %v365_v60 = vmul.f32 %v155_v37, %v155_v37  ;;  %v2795_v26 = vld [vmem:[#allocation5 + $0x80] sm:$0xff]  ;;  %v138_v27 = vld [vmem:[#allocation5 + $0x270] sm:$0xff] }
  0x63   :  { %v573_v61 = vadd.f32 %v572_v42, %v361_v20  ;;  %v343_v51 = vmul.f32 %v133_v39, %v133_v39  ;;  %v552_v63 = vadd.f32 %v551_v43, %v341_v33  ;;  %v324_v50 = vmul.f32 %v114_v46, %v114_v46  ;;  %v2799_v41 = vld [vmem:[#allocation5 + $0x130] sm:$0xff]  ;;  %v119_v43 = vld [vmem:[#allocation5 + $0x1d8] sm:$0xff] }
  0x64   :  { %v594_v3 = vadd.f32 %v593_v55, %v381_v52  ;;  %v532_v62 = vadd.f32 %v531_v58, %v322_v36  ;;  %v304_v1 = vmul.f32 %v2783_v54, %v2783_v54  ;;  %v344_v10 = vmul.f32 %v134_v56, %v134_v56 }
  0x65   :  { %v574_v9 = vadd.f32 %v573_v61, %v362_v24  ;;  %v345_v13 = vmul.f32 %v135_v57, %v135_v57  ;;  %v553_v7 = vadd.f32 %v552_v63, %v342_v47  ;;  %v325_v19 = vmul.f32 %v115_v0, %v115_v0  ;;  %v2797_v24 = vld [vmem:[#allocation5 + $0x88] sm:$0xff]  ;;  %v139_v47 = vld [vmem:[#allocation5 + $0x278] sm:$0xff] }
  0x66   :  { %595 = vadd.xlane.f32.xlu0 %v594_v3  ;;  %v533_v20 = vadd.f32 %v532_v62, %v323_v53  ;;  %v305_v52 = vmul.f32 %v2789_v2, %v2789_v2  ;;  %v512_v5 = vadd.f32 %v303_v40, %v302_v44  ;;  %v346_v23 = vmul.f32 %v136_v6, %v136_v6  ;;  %v2803_v53 = vld [vmem:[#allocation5 + $0x138] sm:$0xff]  ;;  %v121_v63 = vld [vmem:[#allocation5 + $0x1e8] sm:$0xff]  ;;  %v100_v3 = vld [vmem:[#allocation5 + $0x140] sm:$0xff] }
  0x67   :  { %v575_v22 = vadd.f32 %v574_v9, %v363_v30  ;;  %v347_v14 = vmul.f32 %v137_v8, %v137_v8  ;;  %v554_v25 = vadd.f32 %v553_v7, %v343_v51  ;;  %v326_v31 = vmul.f32 %v116_v15, %v116_v15  ;;  %v2801_v30 = vld [vmem:[#allocation5 + $0x90] sm:$0xff]  ;;  %v2809_v61 = vld [vmem:[#allocation5 + $0x98] sm:$0xff]  ;;  %v120_v51 = vld [vmem:[#allocation5 + $0x1e0] sm:$0xff] }
  0x68   :  { %v534_v33 = vadd.f32 %v533_v20, %v324_v50  ;;  %v306_v11 = vmul.f32 %v96_v16, %v96_v16  ;;  %v513_v35 = vadd.f32 %v512_v5, %v304_v1  ;;  %v327_v36 = vmul.f32 %v117_v18, %v117_v18  ;;  %v101_v7 = vld [vmem:[#allocation5 + $0x148] sm:$0xff]  ;;  %v2823_v20 = vld [vmem:[#allocation5] sm:$0xff] }
  0x69   :  { %v576_v37 = vadd.f32 %v575_v22, %v364_v38  ;;  %v555_v39 = vadd.f32 %v554_v25, %v344_v10  ;;  %v307_v42 = vmul.f32 %v97_v21, %v97_v21  ;;  %v286_v56 = vmul.f32 %v2795_v26, %v2795_v26  ;;  %v2817_v10 = vld [vmem:[#allocation5 + $0xa0] sm:$0xff]  ;;  %v2819_v16 = vld [vmem:[#allocation5 + $0xa8] sm:$0xff]  ;;  %v122_v25 = vld [vmem:[#allocation5 + $0x1f0] sm:$0xff] }
  0x6a   :  { %v535_v46 = vadd.f32 %v534_v33, %v325_v19  ;;  %v514_v55 = vadd.f32 %v513_v35, %v305_v52  ;;  %v287_v57 = vmul.f32 %v2797_v24, %v2797_v24  ;;  %v348_v58 = vmul.f32 %v138_v27, %v138_v27  ;;  %v2827_v33 = vld [vmem:[#allocation5 + $0xb0] sm:$0xff] }
  0x6b   :  { %v577_v38 = vadd.f32 %v576_v37, %v365_v60  ;;  %v556_v44 = vadd.f32 %v555_v39, %v345_v13  ;;  %v328_v40 = vmul.f32 %v118_v29, %v118_v29  ;;  %v308_v6 = vmul.f32 %v2799_v41, %v2799_v41  ;;  %v102_v29 = vld [vmem:[#allocation5 + $0x150] sm:$0xff]  ;;  %v123_v39 = vld [vmem:[#allocation5 + $0x1f8] sm:$0xff] }
  0x6c   :  { %v536_v0 = vadd.f32 %v535_v46, %v326_v31  ;;  %v515_v8 = vadd.f32 %v514_v55, %v306_v11  ;;  %v288_v50 = vmul.f32 %v2801_v30, %v2801_v30  ;;  %v349_v62 = vmul.f32 %v139_v47, %v139_v47  ;;  %v103_v46 = vld [vmem:[#allocation5 + $0x158] sm:$0xff] }
  0x6d   :  { %578 = vadd.xlane.f32.xlu1 %v577_v38  ;;  %v557_v1 = vadd.f32 %v556_v44, %v346_v23  ;;  %v329_v60 = vmul.f32 %v119_v43, %v119_v43  ;;  %v309_v9 = vmul.f32 %v2803_v53, %v2803_v53  ;;  %v289_v18 = vmul.f32 %v2809_v61, %v2809_v61  ;;  %v2825_v23 = vld [vmem:[#allocation5 + $0x8] sm:$0xff]  ;;  %v2839_v38 = vld [vmem:[#allocation5 + $0x18] sm:$0xff] }
  0x6e   :  { %v537_v13 = vadd.f32 %v536_v0, %v327_v36  ;;  %v516_v15 = vadd.f32 %v515_v8, %v307_v42  ;;  %v495_v19 = vadd.f32 %v287_v57, %v286_v56  ;;  %v330_v52 = vmul.f32 %v120_v51, %v120_v51  ;;  %v2833_v42 = vld [vmem:[#allocation5 + $0x10] sm:$0xff]  ;;  %v2837_v56 = vld [vmem:[#allocation5 + $0xb8] sm:$0xff]  ;;  %v84_v8 = vld [vmem:[#allocation5 + $0xc0] sm:$0xff] }
  0x6f   :  { %v558_v21 = vadd.f32 %v557_v1, %v347_v14  ;;  %v331_v5 = vmul.f32 %v121_v63, %v121_v63  ;;  %v310_v22 = vmul.f32 %v100_v3, %v100_v3  ;;  %v290_v11 = vmul.f32 %v2817_v10, %v2817_v10  ;;  %v104_v3 = vld [vmem:[#allocation5 + $0x160] sm:$0xff] }
  0x70   :  { %v538_v27 = vadd.f32 %v537_v13, %v328_v40  ;;  %v517_v31 = vadd.f32 %v516_v15, %v308_v6  ;;  %v496_v35 = vadd.f32 %v495_v19, %v288_v50  ;;  %v311_v36 = vmul.f32 %v101_v7, %v101_v7  ;;  %v2845_v1 = vld [vmem:[#allocation5 + $0x20] sm:$0xff] }
  0x71   :  { %v559_v37 = vadd.f32 %v558_v21, %v348_v58  ;;  %v291_v14 = vmul.f32 %v2819_v16, %v2819_v16  ;;  %v270_v47 = vmul.f32 %v2823_v20, %v2823_v20  ;;  %v271_v58 = vmul.f32 %v2825_v23, %v2825_v23  ;;  %v85_v21 = vld [vmem:[#allocation5 + $0xc8] sm:$0xff] }
  0x72   :  { %v539_v43 = vadd.f32 %v538_v27, %v329_v60  ;;  %v518_v55 = vadd.f32 %v517_v31, %v309_v9  ;;  %v497_v57 = vadd.f32 %v496_v35, %v289_v18  ;;  %v332_v40 = vmul.f32 %v122_v25, %v122_v25  ;;  %v105_v18 = vld [vmem:[#allocation5 + $0x168] sm:$0xff]  ;;  %v106_v35 = vld [vmem:[#allocation5 + $0x170] sm:$0xff] }
  0x73   :  { %v560_v44 = vadd.f32 %v559_v37, %v349_v62  ;;  %v312_v51 = vmul.f32 %v102_v29, %v102_v29  ;;  %v292_v63 = vmul.f32 %v2827_v33, %v2827_v33  ;;  %v272_v60 = vmul.f32 %v2833_v42, %v2833_v42 }
  0x74   :  { %v540_v0 = vadd.f32 %v539_v43, %v330_v52  ;;  %v519_v6 = vadd.f32 %v518_v55, %v310_v22  ;;  %v498_v50 = vadd.f32 %v497_v57, %v290_v11  ;;  %v333_v9 = vmul.f32 %v123_v39, %v123_v39  ;;  %v2853_v22 = vld [vmem:[#allocation5 + $0x28] sm:$0xff]  ;;  %v86_v39 = vld [vmem:[#allocation5 + $0xd0] sm:$0xff] }
  0x75   :  { %561 = vadd.xlane.f32.xlu0 %v560_v44  ;;  %v313_v13 = vmul.f32 %v103_v46, %v103_v46  ;;  %v293_v62 = vmul.f32 %v2837_v56, %v2837_v56  ;;  %v273_v7 = vmul.f32 %v2839_v38, %v2839_v38  ;;  %v478_v25 = vadd.f32 %v271_v58, %v270_v47  ;;  %v2857_v57 = vld [vmem:[#allocation5 + $0x30] sm:$0xff]  ;;  %v107_v47 = vld [vmem:[#allocation5 + $0x178] sm:$0xff] }
  0x76   :  { %v541_v15 = vadd.f32 %v540_v0, %v331_v5  ;;  %v520_v19 = vadd.f32 %v519_v6, %v311_v36  ;;  %v499_v52 = vadd.f32 %v498_v50, %v291_v14  ;;  %v314_v27 = vmul.f32 %v104_v3, %v104_v3  ;;  %v87_v44 = vld [vmem:[#allocation5 + $0xd8] sm:$0xff] }
  0x77   :  { %v294_v29 = vmul.f32 %v84_v8, %v84_v8  ;;  %v274_v31 = vmul.f32 %v2845_v1, %v2845_v1  ;;  %v479_v46 = vadd.f32 %v478_v25, %v272_v60  ;;  %v315_v55 = vmul.f32 %v105_v18, %v105_v18  ;;  %v2861_v8 = vld [vmem:[#allocation5 + $0x38] sm:$0xff] }
  0x78   :  { %v542_v11 = vadd.f32 %v541_v15, %v332_v40  ;;  %v521_v37 = vadd.f32 %v520_v19, %v312_v51  ;;  %v500_v43 = vadd.f32 %v499_v52, %v292_v63  ;;  %v295_v5 = vmul.f32 %v85_v21, %v85_v21  ;;  %v88_v63 = vld [vmem:[#allocation5 + $0xe0] sm:$0xff] }
  0x79   :  { %v275_v36 = vmul.f32 %v2853_v22, %v2853_v22  ;;  %v480_v3 = vadd.f32 %v479_v46, %v273_v7  ;;  %v316_v6 = vmul.f32 %v106_v35, %v106_v35  ;;  %v296_v40 = vmul.f32 %v86_v39, %v86_v39  ;;  %v90_v39 = vld [vmem:[#allocation5 + $0xf0] sm:$0xff] }
  0x7a   :  { %v543_v14 = vadd.f32 %v542_v11, %v333_v9  ;;  %v522_v58 = vadd.f32 %v521_v37, %v313_v13  ;;  %v501_v0 = vadd.f32 %v500_v43, %v293_v62  ;;  %v276_v60 = vmul.f32 %v2857_v57, %v2857_v57  ;;  %v68_v9 = vld [vmem:[#allocation5 + $0x40] sm:$0xff]  ;;  %v89_v13 = vld [vmem:[#allocation5 + $0xe8] sm:$0xff] }
  0x7b   :  { %v481_v15 = vadd.f32 %v480_v3, %v274_v31  ;;  %v317_v18 = vmul.f32 %v107_v47, %v107_v47  ;;  %v297_v19 = vmul.f32 %v87_v44, %v87_v44  ;;  %v277_v62 = vmul.f32 %v2861_v8, %v2861_v8  ;;  %v2867_v11 = vld [vmem:[#allocation5 + $0x48] sm:$0xff]  ;;  %v2869_v31 = vld [vmem:[#allocation5 + $0x50] sm:$0xff]  ;;  %v91_v47 = vld [vmem:[#allocation5 + $0xf8] sm:$0xff] }
  0x7c   :  { %544 = vadd.xlane.f32.xlu1 %v543_v14  ;;  %v523_v51 = vadd.f32 %v522_v58, %v314_v27  ;;  %v502_v50 = vadd.f32 %v501_v0, %v294_v29  ;;  %v298_v25 = vmul.f32 %v88_v63, %v88_v63  ;;  %v278_v29 = vmul.f32 %v68_v9, %v68_v9  ;;  %v2873_v58 = vld [vmem:[#allocation5 + $0x58] sm:$0xff]  ;;  %v74_v9 = vld [vmem:[#allocation5 + $0x70] sm:$0xff] }
  0x7d   :  { %v482_v7 = vadd.f32 %v481_v15, %v275_v36  ;;  %v299_v43 = vmul.f32 %v89_v13, %v89_v13  ;;  %v300_v36 = vmul.f32 %v90_v39, %v90_v39  ;;  %v280_v0 = vmul.f32 %v2869_v31, %v2869_v31  ;;  %v45_v39 = vld [vmem:[#allocation2 + $0x8] sm:$0xff] }
  0x7e   :  { %v524_v21 = vadd.f32 %v523_v51, %v315_v55  ;;  %v503_v52 = vadd.f32 %v502_v50, %v295_v5  ;;  %v279_v55 = vmul.f32 %v2867_v11, %v2867_v11  ;;  %v281_v63 = vmul.f32 %v2873_v58, %v2873_v58  ;;  %1105 = vmatprep.mubr.f32.mxu0 %v45_v39 }
  0x7f   :  { %v483_v37 = vadd.f32 %v482_v7, %v276_v60  ;;  %v73_v60 = vld [vmem:[#allocation5 + $0x68] sm:$0xff]  ;;  %v284_v7 = vmul.f32 %v74_v9, %v74_v9 }
  0x80   :  { %v525_v27 = vadd.f32 %v524_v21, %v316_v6  ;;  %v504_v35 = vadd.f32 %v503_v52, %v296_v40  ;;  %v72_v6 = vld [vmem:[#allocation5 + $0x60] sm:$0xff]  ;;  %v301_v40 = vmul.f32 %v91_v47, %v91_v47  ;;  %v283_v13 = vmul.f32 %v73_v60, %v73_v60 }
  0x81   :  { %v484_v5 = vadd.f32 %v483_v37, %v277_v62  ;;  %v75_v62 = vld [vmem:[#allocation5 + $0x78] sm:$0xff] }
  0x82   :  { %v526_v46 = vadd.f32 %v525_v27, %v317_v18  ;;  %v505_v14 = vadd.f32 %v504_v35, %v297_v19  ;;  %v282_v18 = vmul.f32 %v72_v6, %v72_v6  ;;  %v285_v27 = vmul.f32 %v75_v62, %v75_v62 }
  0x83   :  { %v485_v3 = vadd.f32 %v484_v5, %v278_v29 }
  0x84   :  { %527 = vadd.xlane.f32.xlu0 %v526_v46  ;;  %v506_v44 = vadd.f32 %v505_v14, %v298_v25 }
  0x85   :  { %v486_v50 = vadd.f32 %v485_v3, %v279_v55 }
  0x86   :  { %v507_v51 = vadd.f32 %v506_v44, %v299_v43  ;;  %v47_v43 = vld [vmem:[#allocation2 + $0x18] sm:$0xff] }
  0x87   :  { %v487_v19 = vadd.f32 %v486_v50, %v280_v0  ;;  %1175 = vmatprep.mubr.f32.mxu1 %v47_v43 }
  0x88   :  { %v508_v15 = vadd.f32 %v507_v51, %v300_v36 }
  0x89   :  { %v488_v52 = vadd.f32 %v487_v19, %v281_v63 }
  0x8a   :  { %v509_v21 = vadd.f32 %v508_v15, %v301_v40 }
  0x8b   :  { %v489_v25 = vadd.f32 %v488_v52, %v282_v18 }
  0x8c   :  { %510 = vadd.xlane.f32.xlu1 %v509_v21 }
  0x8d   :  { %v490_v35 = vadd.f32 %v489_v25, %v283_v13  ;;  %v2444_v25 = vld [vmem:[#allocation5 + $0x608] sm:$0x3] }
  0x8f   :  { %v491_v29 = vadd.f32 %v490_v35, %v284_v7  ;;  %v2445_v35 = vld [vmem:[#allocation5 + $0x618] sm:$0x3] }
  0x91   :  { %v492_v37 = vadd.f32 %v491_v29, %v285_v27 }
  0x93   :  { %493 = vadd.xlane.f32.xlu0 %v492_v37  ;;  %v2446_v37 = vld [vmem:[#allocation5 + $0x600] sm:$0x3] }
  0xc4   :  { %v664_v14 = vpop.xlane.xlu1 %663 }
  0xc5   :  { %vm788_vm3 = vcmp.eq.f32.partialorder %v664_v14, inf  ;;  %v791_v15 = vand.u32 2147483648, %v664_v14  ;;  %vm790_vm4 = vcmp.eq.f32.partialorder %v664_v14, 0.0 }
  0xca   :  { %v715_v46 = vpop.xlane.xlu0 %714 }
  0xcb   :  { %2380 = vrsqrt.f32 %v715_v46  ;;  %vm802_vm1 = vcmp.eq.f32.partialorder %v715_v46, inf  ;;  %v805_v36 = vand.u32 2147483648, %v715_v46  ;;  %vm804_vm2 = vcmp.eq.f32.partialorder %v715_v46, 0.0 }
  0xcc   :  { %2382 = vrsqrt.f32 %v664_v14 }
  0xd0   :  { %v647_v55 = vpop.xlane.xlu1 %646 }
  0xd1   :  { %2384 = vrsqrt.f32 %v647_v55  ;;  %vm781_vm5 = vcmp.eq.f32.partialorder %v647_v55, inf  ;;  %v784_v43 = vand.u32 2147483648, %v647_v55  ;;  %vm783_vm8 = vcmp.eq.f32.partialorder %v647_v55, 0.0 }
  0xd7   :  { %v681_v44 = vpop.xlane.xlu0 %680 }
  0xd8   :  { %v2381_v5 = vpop.eup %2380  ;;  %2386 = vrsqrt.f32 %v681_v44  ;;  %vm795_vm6 = vcmp.eq.f32.partialorder %v681_v44, inf  ;;  %vm797_vm7 = vcmp.eq.f32.partialorder %v681_v44, 0.0  ;;  %v798_v62 = vand.u32 2147483648, %v681_v44 }
  0xd9   :  { %v801_v47 = vmul.f32 %v2381_v5, %v715_v46  ;;  %v2383_v6 = vpop.eup %2382 }
  0xda   :  { %v787_v51 = vmul.f32 %v2383_v6, %v664_v14 }
  0xdb   :  { %v803_v0 = vsel %vm802_vm1, %v715_v46, %v801_v47 }
  0xdc   :  { %v806_v3 = vsel %vm804_vm2, %v805_v36, %v803_v0  ;;  %v789_v50 = vsel %vm788_vm3, %v664_v14, %v787_v51  ;;  %v2447_v14 = vld [vmem:[#allocation5 + $0x610] sm:$0x3] }
  0xdd   :  { %2388 = vrcp.f32 %v806_v3  ;;  %v792_v19 = vsel %vm790_vm4, %v791_v15, %v789_v50 }
  0xde   :  { %v613_v40 = vpop.xlane.xlu1 %612  ;;  %v2385_v63 = vpop.eup %2384 }
  0xdf   :  { %2390 = vrsqrt.f32 %v613_v40  ;;  %v780_v60 = vmul.f32 %v2385_v63, %v647_v55  ;;  %vm767_vm9 = vcmp.eq.f32.partialorder %v613_v40, inf  ;;  %v770_v6 = vand.u32 2147483648, %v613_v40 }
  0xe0   :  { %vm769_vm10 = vcmp.eq.f32.partialorder %v613_v40, 0.0 }
  0xe1   :  { %v782_v52 = vsel %vm781_vm5, %v647_v55, %v780_v60 }
  0xe2   :  { %v785_v47 = vsel %vm783_vm8, %v784_v43, %v782_v52  ;;  %v2448_v52 = vld [vmem:[#allocation5 + $0x588] sm:$0xff] }
  0xe5   :  { %v2387_v18 = vpop.eup %2386 }
  0xe6   :  { %v794_v9 = vmul.f32 %v2387_v18, %v681_v44  ;;  %v630_v21 = vpop.xlane.xlu0 %629 }
  0xe7   :  { %2392 = vrsqrt.f32 %v630_v21  ;;  %vm774_vm11 = vcmp.eq.f32.partialorder %v630_v21, inf  ;;  %v777_v55 = vand.u32 2147483648, %v630_v21  ;;  %vm776_vm12 = vcmp.eq.f32.partialorder %v630_v21, 0.0 }
  0xe8   :  { %v796_v7 = vsel %vm795_vm6, %v681_v44, %v794_v9  ;;  %2394 = vrcp.f32 %v792_v19 }
  0xe9   :  { %v799_v46 = vsel %vm797_vm7, %v798_v62, %v796_v7 }
  0xea   :  { %v2879_v13 = vpop.eup %2388  ;;  %2396 = vrcp.f32 %v799_v46 }
  0xeb   :  { %v1026_v27 = vmul.f32 %v2444_v25, %v2879_v13  ;;  %v1028_v29 = vmul.f32 %v2445_v35, %v2879_v13  ;;  %v1025_v39 = vmul.f32 %v2446_v37, %v2879_v13  ;;  %v1027_v5 = vmul.f32 %v2447_v14, %v2879_v13  ;;  %v2450_v25 = vld [vmem:[#allocation5 + $0x580] sm:$0xff]  ;;  %v2451_v35 = vld [vmem:[#allocation5 + $0x590] sm:$0xff] }
  0xec   :  { %v2391_v36 = vpop.eup %2390  ;;  %2398 = vrcp.f32 %v785_v47 }
  0xed   :  { %1047 = vmatprep.subr.mxu0 %v1026_v27  ;;  %1117 = vmatprep.subr.mxu1 %v1028_v29  ;;  %v766_v44 = vmul.f32 %v2391_v36, %v613_v40  ;;  %v2455_v36 = vld [vmem:[#allocation5 + $0x510] sm:$0xff] }
  0xee   :  { %1048 = vmatpush1.xpose.msra.mxu0 %v1025_v39  ;;  %1118 = vmatpush1.xpose.msra.mxu1 %v1027_v5  ;;  %v2453_v39 = vld [vmem:[#allocation5 + $0x518] sm:$0xff]  ;;  %v2454_v5 = vld [vmem:[#allocation5 + $0x500] sm:$0xff] }
  0xef   :  { %v596_v0 = vpop.xlane.xlu0 %595  ;;  %v768_v3 = vsel %vm767_vm9, %v613_v40, %v766_v44  ;;  %v2449_v40 = vld [vmem:[#allocation5 + $0x598] sm:$0xff] }
  0xf0   :  { %2400 = vrsqrt.f32 %v596_v0  ;;  %v771_v63 = vsel %vm769_vm10, %v770_v6, %v768_v3  ;;  %vm760_vm13 = vcmp.eq.f32.partialorder %v596_v0, inf  ;;  %vm762_vm14 = vcmp.eq.f32.partialorder %v596_v0, 0.0 }
  0xf4   :  { %v2393_v51 = vpop.eup %2392 }
  0xf5   :  { %v773_v50 = vmul.f32 %v2393_v51, %v630_v21  ;;  %v2885_v60 = vpop.eup %2394  ;;  %v2456_v51 = vld [vmem:[#allocation5 + $0x488] sm:$0xff] }
  0xf6   :  { %v2887_v15 = vpop.xlane.xlu1 %578  ;;  %v996_v43 = vmul.f32 %v2453_v39, %v2885_v60  ;;  %v993_v47 = vmul.f32 %v2454_v5, %v2885_v60  ;;  %v995_v44 = vmul.f32 %v2455_v36, %v2885_v60  ;;  %v2461_v5 = vld [vmem:[#allocation5 + $0x418] sm:$0xff] }
  0xf7   :  { %v2889_v18 = vpop.eup %2396  ;;  %v775_v19 = vsel %vm774_vm11, %v630_v21, %v773_v50  ;;  %2402 = vrsqrt.f32 %v2887_v15  ;;  %v2452_v21 = vld [vmem:[#allocation5 + $0x508] sm:$0xff]  ;;  %v2457_v50 = vld [vmem:[#allocation5 + $0x498] sm:$0xff]  ;;  %vm753_vm15 = vcmp.eq.f32.partialorder %v2887_v15, inf  ;;  %vm755_vm0 = vcmp.eq.f32.partialorder %v2887_v15, 0.0 }
  0xf8   :  { %2404 = vrcp.f32 %v771_v63  ;;  %v778_v9 = vsel %vm776_vm12, %v777_v55, %v775_v19  ;;  %v1010_v62 = vmul.f32 %v2448_v52, %v2889_v18  ;;  %v1012_v7 = vmul.f32 %v2449_v40, %v2889_v18 }
  0xf9   :  { %2406 = vrcp.f32 %v778_v9  ;;  %v1009_v27 = vmul.f32 %v2450_v25, %v2889_v18  ;;  %v1011_v29 = vmul.f32 %v2451_v35, %v2889_v18  ;;  %v994_v37 = vmul.f32 %v2452_v21, %v2885_v60  ;;  %v2898_v46 = vpop.eup %2398 }
  0xfa   :  { %1049 = vmatprep.subr.mxu0 %v1010_v62  ;;  %1119 = vmatprep.subr.mxu1 %v1012_v7  ;;  %v978_v63 = vmul.f32 %v2456_v51, %v2898_v46  ;;  %v980_v55 = vmul.f32 %v2457_v50, %v2898_v46  ;;  %v763_v19 = vand.u32 2147483648, %v596_v0  ;;  %v2458_v62 = vld [vmem:[#allocation5 + $0x480] sm:$0xff]  ;;  %v2459_v7 = vld [vmem:[#allocation5 + $0x490] sm:$0xff]  ;;  %v756_v35 = vand.u32 2147483648, %v2887_v15  ;;  %v2464_v50 = vld [vmem:[#allocation5 + $0x388] sm:$0xff] }
  0xfb   :  { %1050 = vmatpush1.xpose.msra.mxu0 %v1009_v27  ;;  %1120 = vmatpush1.xpose.msra.mxu1 %v1011_v29  ;;  %v977_v40 = vmul.f32 %v2458_v62, %v2898_v46  ;;  %v979_v25 = vmul.f32 %v2459_v7, %v2898_v46  ;;  %v2463_v51 = vld [vmem:[#allocation5 + $0x410] sm:$0xff]  ;;  %v2466_v62 = vld [vmem:[#allocation5 + $0x380] sm:$0xff]  ;;  %vm2174_vm12 = vcmask 801792  }
  0xfc   :  { %1051 = vmatprep.subr.mxu0 %v994_v37  ;;  %1121 = vmatprep.subr.mxu1 %v996_v43  ;;  %v2460_v43 = vld [vmem:[#allocation5 + $0x408] sm:$0xff]  ;;  %v2467_v7 = vld [vmem:[#allocation5 + $0x390] sm:$0xff] }
  0xfd   :  { %v2401_v14 = vpop.eup %2400 }
  0xfe   :  { %v759_v3 = vmul.f32 %v2401_v14, %v596_v0  ;;  %v2902_v6 = vpop.xlane.xlu0 %561 }
  0xff   :  { %2408 = vrsqrt.f32 %v2902_v6  ;;  %1052 = vmatpush1.xpose.msra.mxu0 %v993_v47  ;;  %1122 = vmatpush1.xpose.msra.mxu1 %v995_v44  ;;  %v2462_v44 = vld [vmem:[#allocation5 + $0x400] sm:$0xff]  ;;  %vm746_vm1 = vcmp.eq.f32.partialorder %v2902_v6, inf  ;;  %vm748_vm2 = vcmp.eq.f32.partialorder %v2902_v6, 0.0 }
 0x100   :  { %v761_v9 = vsel %vm760_vm13, %v596_v0, %v759_v3  ;;  %1053 = vmatprep.subr.mxu0 %v978_v63  ;;  %1123 = vmatprep.subr.mxu1 %v980_v55 }
 0x101   :  { %v764_v52 = vsel %vm762_vm14, %v763_v19, %v761_v9 }
 0x102   :  { %2410 = vrcp.f32 %v764_v52  ;;  %v749_v52 = vand.u32 2147483648, %v2902_v6 }
 0x103   :  { %1054 = vmatpush1.xpose.msra.mxu0 %v977_v40  ;;  %1124 = vmatpush1.xpose.msra.mxu1 %v979_v25 }
 0x104   :  { %v2403_v27 = vpop.eup %2402 }
 0x105   :  { %v2911_v29 = vpop.eup %2404  ;;  %v752_v0 = vmul.f32 %v2403_v27, %v2887_v15  ;;  %v2915_v21 = vpop.xlane.xlu1 %544 }
 0x106   :  { %v2917_v37 = vpop.eup %2406  ;;  %2412 = vrsqrt.f32 %v2915_v21  ;;  %v946_v55 = vmul.f32 %v2464_v50, %v2911_v29  ;;  %v945_v40 = vmul.f32 %v2466_v62, %v2911_v29  ;;  %v947_v25 = vmul.f32 %v2467_v7, %v2911_v29  ;;  %v2472_v62 = vld [vmem:[#allocation5 + $0x288] sm:$0xff] }
 0x107   :  { %v754_v39 = vsel %vm753_vm15, %v2887_v15, %v752_v0  ;;  %v962_v14 = vmul.f32 %v2460_v43, %v2917_v37  ;;  %v964_v47 = vmul.f32 %v2461_v5, %v2917_v37  ;;  %v961_v3 = vmul.f32 %v2462_v44, %v2917_v37  ;;  %v2465_v15 = vld [vmem:[#allocation5 + $0x398] sm:$0xff]  ;;  %v2470_v44 = vld [vmem:[#allocation5 + $0x300] sm:$0xff] }
 0x108   :  { %v757_v36 = vsel %vm755_vm0, %v756_v35, %v754_v39  ;;  %v963_v63 = vmul.f32 %v2463_v51, %v2917_v37  ;;  %v948_v19 = vmul.f32 %v2465_v15, %v2911_v29  ;;  %v2471_v51 = vld [vmem:[#allocation5 + $0x310] sm:$0xff]  ;;  %vm739_vm3 = vcmp.eq.f32.partialorder %v2915_v21, inf }
 0x109   :  { %2414 = vrcp.f32 %v757_v36  ;;  %1055 = vmatprep.subr.mxu0 %v962_v14  ;;  %1125 = vmatprep.subr.mxu1 %v964_v47  ;;  %v2468_v14 = vld [vmem:[#allocation5 + $0x308] sm:$0xff]  ;;  %v2469_v47 = vld [vmem:[#allocation5 + $0x318] sm:$0xff]  ;;  %vm741_vm4 = vcmp.eq.f32.partialorder %v2915_v21, 0.0  ;;  %vm2283_vm0 = vcmask 64512  }
 0x10a   :  { %1056 = vmatpush1.xpose.msra.mxu0 %v961_v3  ;;  %1126 = vmatpush1.xpose.msra.mxu1 %v963_v63 }
 0x10b   :  { %1057 = vmatprep.subr.mxu0 %v946_v55  ;;  %1127 = vmatprep.subr.mxu1 %v948_v19 }
 0x10c   :  { %v2409_v9 = vpop.eup %2408 }
 0x10d   :  { %v745_v27 = vmul.f32 %v2409_v9, %v2902_v6  ;;  %v528_v35 = vpop.xlane.xlu0 %527 }
 0x10e   :  { %2416 = vrsqrt.f32 %v528_v35  ;;  %1058 = vmatpush1.xpose.msra.mxu0 %v945_v40  ;;  %1128 = vmatpush1.xpose.msra.mxu1 %v947_v25  ;;  %v2473_v25 = vld [vmem:[#allocation5 + $0x280] sm:$0xff]  ;;  %vm732_vm5 = vcmp.eq.f32.partialorder %v528_v35, inf  ;;  %vm734_vm6 = vcmp.eq.f32.partialorder %v528_v35, 0.0 }
 0x10f   :  { %v2933_v0 = vpop.eup %2410  ;;  %v747_v39 = vsel %vm746_vm1, %v2902_v6, %v745_v27  ;;  %v742_v6 = vand.u32 2147483648, %v2915_v21  ;;  %vm2265_vm1 = vcmask 7168  }
 0x110   :  { %v750_v43 = vsel %vm748_vm2, %v749_v52, %v747_v39  ;;  %v930_v5 = vmul.f32 %v2468_v14, %v2933_v0  ;;  %v932_v36 = vmul.f32 %v2469_v47, %v2933_v0  ;;  %v929_v3 = vmul.f32 %v2470_v44, %v2933_v0  ;;  %v2474_v39 = vld [vmem:[#allocation5 + $0x290] sm:$0xff] }
 0x111   :  { %2418 = vrcp.f32 %v750_v43  ;;  %v931_v63 = vmul.f32 %v2471_v51, %v2933_v0  ;;  %v735_v14 = vand.u32 2147483648, %v528_v35 }
 0x112   :  { %1059 = vmatprep.subr.mxu0 %v930_v5  ;;  %1129 = vmatprep.subr.mxu1 %v932_v36 }
 0x113   :  { %v2413_v50 = vpop.eup %2412  ;;  %1060 = vmatpush1.xpose.msra.mxu0 %v929_v3  ;;  %1130 = vmatpush1.xpose.msra.mxu1 %v931_v63  ;;  %v2475_v63 = vld [vmem:[#allocation5 + $0x200] sm:$0xff] }
 0x114   :  { %v738_v55 = vmul.f32 %v2413_v50, %v2915_v21 }
 0x115   :  { %v511_v15 = vpop.xlane.xlu1 %510 }
 0x116   :  { %v2944_v19 = vpop.eup %2414  ;;  %v740_v9 = vsel %vm739_vm3, %v2915_v21, %v738_v55  ;;  %2420 = vrsqrt.f32 %v511_v15  ;;  %vm725_vm7 = vcmp.eq.f32.partialorder %v511_v15, inf  ;;  %v728_v55 = vand.u32 2147483648, %v511_v15 }
 0x117   :  { %v743_v52 = vsel %vm741_vm4, %v742_v6, %v740_v9  ;;  %v914_v40 = vmul.f32 %v2472_v62, %v2944_v19  ;;  %v916_v7 = vmul.f32 %v2944_v19, %v2747_v45  ;;  %v913_v27 = vmul.f32 %v2473_v25, %v2944_v19 }
 0x118   :  { %2422 = vrcp.f32 %v743_v52  ;;  %v915_v43 = vmul.f32 %v2474_v39, %v2944_v19  ;;  %vm727_vm8 = vcmp.eq.f32.partialorder %v511_v15, 0.0 }
 0x119   :  { %1061 = vmatprep.subr.mxu0 %v914_v40  ;;  %1131 = vmatprep.subr.mxu1 %v916_v7 }
 0x11a   :  { %1062 = vmatpush1.xpose.msra.mxu0 %v913_v27  ;;  %1132 = vmatpush1.xpose.msra.mxu1 %v915_v43 }
 0x11b   :  { %v2417_v21 = vpop.eup %2416 }
 0x11c   :  { %v731_v5 = vmul.f32 %v2417_v21, %v528_v35  ;;  %v494_v47 = vpop.xlane.xlu0 %493 }
 0x11d   :  { %2424 = vrsqrt.f32 %v494_v47  ;;  %vm718_vm9 = vcmp.eq.f32.partialorder %v494_v47, inf  ;;  %vm720_vm10 = vcmp.eq.f32.partialorder %v494_v47, 0.0 }
 0x11e   :  { %v2952_v36 = vpop.eup %2418  ;;  %v733_v45 = vsel %vm732_vm5, %v528_v35, %v731_v5 }
 0x11f   :  { %v736_v44 = vsel %vm734_vm6, %v735_v14, %v733_v45  ;;  %v898_v3 = vmul.f32 %v2952_v36, %v2751_v4  ;;  %v900_v51 = vmul.f32 %v2952_v36, %v2757_v28  ;;  %v897_v50 = vmul.f32 %v2475_v63, %v2952_v36 }
 0x120   :  { %2426 = vrcp.f32 %v736_v44  ;;  %v899_v6 = vmul.f32 %v2952_v36, %v2753_v17  ;;  %v2477_v44 = vld [vmem:[#allocation5 + $0x638] sm:$0x3] }
 0x121   :  { %1063 = vmatprep.subr.mxu0 %v898_v3  ;;  %1133 = vmatprep.subr.mxu1 %v900_v51  ;;  %v1032_v3 = vmul.f32 %v2477_v44, %v2879_v13  ;;  %v3005_v51 = vld [vmem:[#allocation2 + $0x10] sm:$0xff]  ;;  %v2494_v44 = vld [vmem:[#allocation5 + $0x420] sm:$0xff] }
 0x122   :  { %1064 = vmatpush1.xpose.msra.mxu0 %v897_v50  ;;  %1134 = vmatpush1.xpose.msra.mxu1 %v899_v6  ;;  %v2480_v50 = vld [vmem:[#allocation5 + $0x5a8] sm:$0xff] }
 0x123   :  { %v2421_v35 = vpop.eup %2420  ;;  %v1014_v6 = vmul.f32 %v2480_v50, %v2889_v18  ;;  %v2497_v50 = vld [vmem:[#allocation5 + $0x3b8] sm:$0xff] }
 0x124   :  { %v724_v9 = vmul.f32 %v2421_v35, %v511_v15  ;;  %v2481_v35 = vld [vmem:[#allocation5 + $0x5b8] sm:$0xff] }
 0x125   :  { %v2961_v4 = vpop.eup %2422 }
 0x126   :  { %v726_v52 = vsel %vm725_vm7, %v511_v15, %v724_v9  ;;  %v882_v28 = vmul.f32 %v2961_v4, %v2765_v49  ;;  %v884_v62 = vmul.f32 %v2961_v4, %v2773_v12  ;;  %v881_v17 = vmul.f32 %v2961_v4, %v2763_v48  ;;  %v3013_v9 = vld [vmem:[#allocation2 + $0x28] sm:$0xff] }
 0x127   :  { %v729_v40 = vsel %vm727_vm8, %v728_v55, %v726_v52  ;;  %v883_v7 = vmul.f32 %v2961_v4, %v2767_v59  ;;  %v721_v15 = vand.u32 2147483648, %v494_v47  ;;  %v1016_v55 = vmul.f32 %v2481_v35, %v2889_v18  ;;  %v3015_v52 = vld [vmem:[#allocation2 + $0x38] sm:$0xff]  ;;  %v2498_v35 = vld [vmem:[#allocation5 + $0x3a0] sm:$0xff] }
 0x128   :  { %2428 = vrcp.f32 %v729_v40  ;;  %1065 = vmatprep.subr.mxu0 %v882_v28  ;;  %1135 = vmatprep.subr.mxu1 %v884_v62  ;;  %v2482_v28 = vld [vmem:[#allocation5 + $0x5a0] sm:$0xff]  ;;  %v2483_v40 = vld [vmem:[#allocation5 + $0x5b0] sm:$0xff] }
 0x129   :  { %1066 = vmatpush1.xpose.msra.mxu0 %v881_v17  ;;  %1136 = vmatpush1.xpose.msra.mxu1 %v883_v7  ;;  %v1013_v62 = vmul.f32 %v2482_v28, %v2889_v18  ;;  %v1015_v17 = vmul.f32 %v2483_v40, %v2889_v18  ;;  %v2484_v7 = vld [vmem:[#allocation5 + $0x528] sm:$0xff]  ;;  %v2499_v28 = vld [vmem:[#allocation5 + $0x3b0] sm:$0xff] }
 0x12a   :  { %v2425_v25 = vpop.eup %2424  ;;  %v2500_v40 = vld [vmem:[#allocation5 + $0x328] sm:$0xff] }
 0x12b   :  { %v717_v27 = vmul.f32 %v2425_v25, %v494_v47  ;;  %v998_v25 = vmul.f32 %v2484_v7, %v2885_v60  ;;  %v2501_v7 = vld [vmem:[#allocation5 + $0x338] sm:$0xff] }
 0x12d   :  { %v2971_v49 = vpop.eup %2426  ;;  %v719_v12 = vsel %vm718_vm9, %v494_v47, %v717_v27 }
 0x12e   :  { %v866_v39 = vmul.f32 %v2971_v49, %v2781_v34  ;;  %v868_v48 = vmul.f32 %v2971_v49, %v2789_v2  ;;  %v722_v59 = vsel %vm720_vm10, %v721_v15, %v719_v12  ;;  %v865_v43 = vmul.f32 %v2971_v49, %v2779_v32  ;;  %v2485_v15 = vld [vmem:[#allocation5 + $0x538] sm:$0xff]  ;;  %v2486_v12 = vld [vmem:[#allocation5 + $0x520] sm:$0xff] }
 0x12f   :  { %v867_v21 = vmul.f32 %v2971_v49, %v2783_v54  ;;  %2430 = vrcp.f32 %v722_v59  ;;  %v1000_v27 = vmul.f32 %v2485_v15, %v2885_v60  ;;  %v2502_v15 = vld [vmem:[#allocation5 + $0x320] sm:$0xff] }
 0x130   :  { %1067 = vmatprep.subr.mxu0 %v866_v39  ;;  %1137 = vmatprep.subr.mxu1 %v868_v48  ;;  %v997_v39 = vmul.f32 %v2486_v12, %v2885_v60  ;;  %v2487_v48 = vld [vmem:[#allocation5 + $0x530] sm:$0xff] }
 0x131   :  { %1068 = vmatpush1.xpose.msra.mxu0 %v865_v43  ;;  %1138 = vmatpush1.xpose.msra.mxu1 %v867_v21  ;;  %v999_v59 = vmul.f32 %v2487_v48, %v2885_v60  ;;  %v2488_v43 = vld [vmem:[#allocation5 + $0x4a8] sm:$0xff]  ;;  %v2503_v12 = vld [vmem:[#allocation5 + $0x330] sm:$0xff] }
 0x132   :  { %v982_v21 = vmul.f32 %v2488_v43, %v2898_v46  ;;  %v2504_v48 = vld [vmem:[#allocation5 + $0x2a8] sm:$0xff]  ;;  %v2505_v43 = vld [vmem:[#allocation5 + $0x2b8] sm:$0xff] }
 0x135   :  { %v2981_v14 = vpop.eup %2428 }
 0x136   :  { %v850_v34 = vmul.f32 %v2981_v14, %v2797_v24  ;;  %v852_v2 = vmul.f32 %v2981_v14, %v2809_v61  ;;  %v849_v5 = vmul.f32 %v2981_v14, %v2795_v26  ;;  %v851_v32 = vmul.f32 %v2981_v14, %v2801_v30  ;;  %v2476_v30 = vld [vmem:[#allocation5 + $0x628] sm:$0x3] }
 0x137   :  { %v1030_v45 = vmul.f32 %v2476_v30, %v2879_v13  ;;  %v2493_v30 = vld [vmem:[#allocation5 + $0x438] sm:$0xff] }
 0x138   :  { %1069 = vmatprep.subr.mxu0 %v850_v34  ;;  %1139 = vmatprep.subr.mxu1 %v852_v2  ;;  %v2489_v34 = vld [vmem:[#allocation5 + $0x4b8] sm:$0xff] }
 0x139   :  { %1070 = vmatpush1.xpose.msra.mxu0 %v849_v5  ;;  %1140 = vmatpush1.xpose.msra.mxu1 %v851_v32  ;;  %v984_v2 = vmul.f32 %v2489_v34, %v2898_v46  ;;  %v2490_v5 = vld [vmem:[#allocation5 + $0x4a0] sm:$0xff] }
 0x13a   :  { %v981_v32 = vmul.f32 %v2490_v5, %v2898_v46  ;;  %v2506_v34 = vld [vmem:[#allocation5 + $0x2a0] sm:$0xff]  ;;  %v2507_v5 = vld [vmem:[#allocation5 + $0x2b0] sm:$0xff] }
 0x13c   :  { %v2991_v54 = vpop.eup %2430 }
 0x13d   :  { %v834_v47 = vmul.f32 %v2991_v54, %v2825_v23  ;;  %v836_v24 = vmul.f32 %v2991_v54, %v2839_v38  ;;  %v833_v61 = vmul.f32 %v2991_v54, %v2823_v20  ;;  %v835_v26 = vmul.f32 %v2991_v54, %v2833_v42  ;;  %v3003_v23 = vld [vmem:[#allocation2] sm:$0xff]  ;;  %v2479_v42 = vld [vmem:[#allocation5 + $0x630] sm:$0x3] }
 0x13e   :  { %v2478_v20 = vld [vmem:[#allocation5 + $0x620] sm:$0x3]  ;;  %v1031_v63 = vmul.f32 %v2479_v42, %v2879_v13  ;;  %v2496_v42 = vld [vmem:[#allocation5 + $0x3a8] sm:$0xff] }
 0x13f   :  { %1071 = vmatprep.subr.mxu0 %v834_v47  ;;  %1141 = vmatprep.subr.mxu1 %v836_v24  ;;  %v1029_v38 = vmul.f32 %v2478_v20, %v2879_v13  ;;  %v2491_v47 = vld [vmem:[#allocation5 + $0x4b0] sm:$0xff] }
 0x140   :  { %1072 = vmatpush1.xpose.msra.mxu0 %v833_v61  ;;  %1142 = vmatpush1.xpose.msra.mxu1 %v835_v26  ;;  %v983_v24 = vmul.f32 %v2491_v47, %v2898_v46  ;;  %v2492_v61 = vld [vmem:[#allocation5 + $0x428] sm:$0xff]  ;;  %v2495_v20 = vld [vmem:[#allocation5 + $0x430] sm:$0xff] }
 0x141   :  { %1187 = vmatprep.subr.mxu0 %v1030_v45  ;;  %1257 = vmatprep.subr.mxu1 %v1032_v3  ;;  %v966_v26 = vmul.f32 %v2492_v61, %v2917_v37  ;;  %v968_v45 = vmul.f32 %v2493_v30, %v2917_v37  ;;  %v965_v3 = vmul.f32 %v2494_v44, %v2917_v37  ;;  %v2508_v47 = vld [vmem:[#allocation5 + $0x228] sm:$0xff]  ;;  %v2509_v61 = vld [vmem:[#allocation5 + $0x238] sm:$0xff]  ;;  %v2510_v30 = vld [vmem:[#allocation5 + $0x220] sm:$0xff] }
 0x142   :  { %v2511_v44 = vld [vmem:[#allocation5 + $0x230] sm:$0xff] }
 0x143   :  { %1106 = vmatmul.mubr.f32.vlgmr.msra.gmra.mxu0 %v3003_v23  ;;  %1176 = vmatmul.mubr.f32.vlgmr.msra.gmra.mxu1 %v3005_v51 }
 0x144   :  { %1188 = vmatpush1.xpose.msra.mxu0 %v1029_v38  ;;  %1258 = vmatpush1.xpose.msra.mxu1 %v1031_v63  ;;  %v967_v38 = vmul.f32 %v2495_v20, %v2917_v37  ;;  %v950_v63 = vmul.f32 %v2496_v42, %v2911_v29  ;;  %v2512_v20 = vld [vmem:[#allocation5 + $0x1a8] sm:$0xff]  ;;  %v2513_v42 = vld [vmem:[#allocation5 + $0x1b8] sm:$0xff] }
 0x145   :  { %1189 = vmatprep.subr.mxu0 %v1014_v6  ;;  %1259 = vmatprep.subr.mxu1 %v1016_v55  ;;  %v952_v6 = vmul.f32 %v2497_v50, %v2911_v29  ;;  %v949_v55 = vmul.f32 %v2498_v35, %v2911_v29  ;;  %v2514_v50 = vld [vmem:[#allocation5 + $0x1a0] sm:$0xff]  ;;  %v2515_v35 = vld [vmem:[#allocation5 + $0x1b0] sm:$0xff] }
 0x146   :  { %1245 = vmatprep.mubr.f32.mxu0 %v3013_v9  ;;  %1315 = vmatprep.mubr.f32.mxu1 %v3015_v52 }
 0x148   :  { %1190 = vmatpush1.xpose.msra.mxu0 %v1013_v62  ;;  %1260 = vmatpush1.xpose.msra.mxu1 %v1015_v17  ;;  %v951_v62 = vmul.f32 %v2499_v28, %v2911_v29  ;;  %v934_v17 = vmul.f32 %v2500_v40, %v2933_v0  ;;  %v2516_v28 = vld [vmem:[#allocation5 + $0x128] sm:$0xff]  ;;  %v872_v40 = vmul.f32 %v2971_v49, %v2803_v53 }
 0x149   :  { %1191 = vmatprep.subr.mxu0 %v998_v25  ;;  %1261 = vmatprep.subr.mxu1 %v1000_v27  ;;  %v936_v25 = vmul.f32 %v2501_v7, %v2933_v0  ;;  %v933_v27 = vmul.f32 %v2502_v15, %v2933_v0  ;;  %v854_v15 = vmul.f32 %v2981_v14, %v2819_v16 }
 0x14a   :  { %v853_v53 = vmul.f32 %v2981_v14, %v2817_v10  ;;  %v837_v16 = vmul.f32 %v2991_v54, %v2845_v1  ;;  %v2518_v10 = vld [vmem:[#allocation5 + $0x648] sm:$0x3] }
 0x14c   :  { %1192 = vmatpush1.xpose.msra.mxu0 %v997_v39  ;;  %1262 = vmatpush1.xpose.msra.mxu1 %v999_v59  ;;  %v935_v39 = vmul.f32 %v2503_v12, %v2933_v0  ;;  %v918_v59 = vmul.f32 %v2504_v48, %v2944_v19  ;;  %v855_v12 = vmul.f32 %v2981_v14, %v2827_v33  ;;  %v2519_v33 = vld [vmem:[#allocation5 + $0x658] sm:$0x3] }
 0x14d   :  { %1193 = vmatprep.subr.mxu0 %v982_v21  ;;  %1263 = vmatprep.subr.mxu1 %v984_v2  ;;  %v920_v21 = vmul.f32 %v2505_v43, %v2944_v19  ;;  %v917_v2 = vmul.f32 %v2506_v34, %v2944_v19  ;;  %v1034_v48 = vmul.f32 %v2518_v10, %v2879_v13  ;;  %v2520_v43 = vld [vmem:[#allocation5 + $0x640] sm:$0x3]  ;;  %v2522_v34 = vld [vmem:[#allocation5 + $0x5c8] sm:$0xff] }
 0x14e   :  { %v1033_v1 = vmul.f32 %v2520_v43, %v2879_v13  ;;  %v2539_v43 = vld [vmem:[#allocation5 + $0x3d8] sm:$0xff] }
 0x150   :  { %1194 = vmatpush1.xpose.msra.mxu0 %v981_v32  ;;  %1264 = vmatpush1.xpose.msra.mxu1 %v983_v24  ;;  %v919_v32 = vmul.f32 %v2507_v5, %v2944_v19  ;;  %v902_v24 = vmul.f32 %v2508_v47, %v2952_v36  ;;  %v2523_v5 = vld [vmem:[#allocation5 + $0x5d8] sm:$0xff]  ;;  %v3087_v47 = vld [vmem:[#allocation2 + $0x48] sm:$0xff] }
 0x151   :  { %1195 = vmatprep.subr.mxu0 %v966_v26  ;;  %1265 = vmatprep.subr.mxu1 %v968_v45  ;;  %v904_v26 = vmul.f32 %v2509_v61, %v2952_v36  ;;  %v901_v45 = vmul.f32 %v2510_v30, %v2952_v36  ;;  %v2524_v61 = vld [vmem:[#allocation5 + $0x5c0] sm:$0xff]  ;;  %v2525_v30 = vld [vmem:[#allocation5 + $0x5d0] sm:$0xff] }
 0x154   :  { %1196 = vmatpush1.xpose.msra.mxu0 %v965_v3  ;;  %1266 = vmatpush1.xpose.msra.mxu1 %v967_v38  ;;  %v903_v3 = vmul.f32 %v2511_v44, %v2952_v36  ;;  %v886_v38 = vmul.f32 %v2512_v20, %v2961_v4  ;;  %v2526_v44 = vld [vmem:[#allocation5 + $0x548] sm:$0xff]  ;;  %v2527_v20 = vld [vmem:[#allocation5 + $0x558] sm:$0xff] }
 0x155   :  { %1197 = vmatprep.subr.mxu0 %v950_v63  ;;  %1267 = vmatprep.subr.mxu1 %v952_v6  ;;  %v888_v63 = vmul.f32 %v2513_v42, %v2961_v4  ;;  %v885_v6 = vmul.f32 %v2514_v50, %v2961_v4  ;;  %v2528_v42 = vld [vmem:[#allocation5 + $0x540] sm:$0xff]  ;;  %v2529_v50 = vld [vmem:[#allocation5 + $0x550] sm:$0xff] }
 0x158   :  { %1198 = vmatpush1.xpose.msra.mxu0 %v949_v55  ;;  %1268 = vmatpush1.xpose.msra.mxu1 %v951_v62  ;;  %v887_v55 = vmul.f32 %v2515_v35, %v2961_v4  ;;  %v870_v62 = vmul.f32 %v2516_v28, %v2971_v49  ;;  %v2530_v35 = vld [vmem:[#allocation5 + $0x4c8] sm:$0xff]  ;;  %v2531_v28 = vld [vmem:[#allocation5 + $0x4d8] sm:$0xff] }
 0x159   :  { %1199 = vmatprep.subr.mxu0 %v934_v17  ;;  %1269 = vmatprep.subr.mxu1 %v936_v25  ;;  %v2517_v17 = vld [vmem:[#allocation5 + $0x120] sm:$0xff]  ;;  %v871_v25 = vmul.f32 %v2971_v49, %v2799_v41  ;;  %v840_v41 = vmul.f32 %v2991_v54, %v2861_v8  ;;  %v3079_v8 = vld [vmem:[#allocation2 + $0x30] sm:$0xff] }
 0x15a   :  { %v869_v7 = vmul.f32 %v2517_v17, %v2971_v49 }
 0x15c   :  { %1200 = vmatpush1.xpose.msra.mxu0 %v933_v27  ;;  %1270 = vmatpush1.xpose.msra.mxu1 %v935_v39  ;;  %v856_v27 = vmul.f32 %v2981_v14, %v2837_v56  ;;  %v838_v39 = vmul.f32 %v2991_v54, %v2853_v22  ;;  %v839_v56 = vmul.f32 %v2991_v54, %v2857_v57  ;;  %v3077_v22 = vld [vmem:[#allocation2 + $0x20] sm:$0xff] }
 0x15d   :  { %1201 = vmatprep.subr.mxu0 %v918_v59  ;;  %1271 = vmatprep.subr.mxu1 %v920_v21  ;;  %v1036_v59 = vmul.f32 %v2519_v33, %v2879_v13  ;;  %v2521_v21 = vld [vmem:[#allocation5 + $0x650] sm:$0x3]  ;;  %v2538_v33 = vld [vmem:[#allocation5 + $0x3c8] sm:$0xff] }
 0x15e   :  { %v1035_v57 = vmul.f32 %v2521_v21, %v2879_v13  ;;  %v2540_v21 = vld [vmem:[#allocation5 + $0x3c0] sm:$0xff] }
 0x160   :  { %1202 = vmatpush1.xpose.msra.mxu0 %v917_v2  ;;  %1272 = vmatpush1.xpose.msra.mxu1 %v919_v32  ;;  %v1018_v2 = vmul.f32 %v2522_v34, %v2889_v18  ;;  %v1020_v32 = vmul.f32 %v2523_v5, %v2889_v18  ;;  %v2541_v34 = vld [vmem:[#allocation5 + $0x3d0] sm:$0xff]  ;;  %v2542_v5 = vld [vmem:[#allocation5 + $0x348] sm:$0xff] }
 0x161   :  { %1203 = vmatprep.subr.mxu0 %v902_v24  ;;  %1273 = vmatprep.subr.mxu1 %v904_v26  ;;  %v3089_v24 = vld [vmem:[#allocation2 + $0x58] sm:$0xff]  ;;  %v1017_v26 = vmul.f32 %v2524_v61, %v2889_v18 }
 0x162   :  { %v2543_v61 = vld [vmem:[#allocation5 + $0x358] sm:$0xff] }
 0x164   :  { %1204 = vmatpush1.xpose.msra.mxu0 %v901_v45  ;;  %1274 = vmatpush1.xpose.msra.mxu1 %v903_v3  ;;  %v1019_v45 = vmul.f32 %v2525_v30, %v2889_v18  ;;  %v1002_v3 = vmul.f32 %v2526_v44, %v2885_v60  ;;  %v2544_v30 = vld [vmem:[#allocation5 + $0x340] sm:$0xff]  ;;  %v2545_v44 = vld [vmem:[#allocation5 + $0x350] sm:$0xff] }
 0x165   :  { %1205 = vmatprep.subr.mxu0 %v886_v38  ;;  %1275 = vmatprep.subr.mxu1 %v888_v63  ;;  %v1004_v38 = vmul.f32 %v2527_v20, %v2885_v60  ;;  %v1001_v63 = vmul.f32 %v2528_v42, %v2885_v60  ;;  %v2546_v20 = vld [vmem:[#allocation5 + $0x2c8] sm:$0xff]  ;;  %v2547_v42 = vld [vmem:[#allocation5 + $0x2d8] sm:$0xff] }
 0x168   :  { %1206 = vmatpush1.xpose.msra.mxu0 %v885_v6  ;;  %1276 = vmatpush1.xpose.msra.mxu1 %v887_v55  ;;  %v1003_v6 = vmul.f32 %v2529_v50, %v2885_v60  ;;  %v986_v55 = vmul.f32 %v2530_v35, %v2898_v46  ;;  %v2548_v50 = vld [vmem:[#allocation5 + $0x2c0] sm:$0xff]  ;;  %v2549_v35 = vld [vmem:[#allocation5 + $0x2d0] sm:$0xff] }
 0x169   :  { %1207 = vmatprep.subr.mxu0 %v870_v62  ;;  %1277 = vmatprep.subr.mxu1 %v872_v40  ;;  %v988_v62 = vmul.f32 %v2531_v28, %v2898_v46  ;;  %v2532_v40 = vld [vmem:[#allocation5 + $0x4c0] sm:$0xff]  ;;  %v2550_v28 = vld [vmem:[#allocation5 + $0x248] sm:$0xff] }
 0x16a   :  { %v985_v17 = vmul.f32 %v2532_v40, %v2898_v46  ;;  %v2551_v40 = vld [vmem:[#allocation5 + $0x258] sm:$0xff] }
 0x16c   :  { %1208 = vmatpush1.xpose.msra.mxu0 %v869_v7  ;;  %1278 = vmatpush1.xpose.msra.mxu1 %v871_v25  ;;  %v2533_v7 = vld [vmem:[#allocation5 + $0x4d0] sm:$0xff] }
 0x16d   :  { %1209 = vmatprep.subr.mxu0 %v854_v15  ;;  %1279 = vmatprep.subr.mxu1 %v856_v27  ;;  %v987_v25 = vmul.f32 %v2533_v7, %v2898_v46  ;;  %v2534_v15 = vld [vmem:[#allocation5 + $0x448] sm:$0xff]  ;;  %v2552_v7 = vld [vmem:[#allocation5 + $0x240] sm:$0xff] }
 0x16e   :  { %v970_v27 = vmul.f32 %v2534_v15, %v2917_v37  ;;  %v2553_v15 = vld [vmem:[#allocation5 + $0x250] sm:$0xff] }
 0x170   :  { %1210 = vmatpush1.xpose.msra.mxu0 %v853_v53  ;;  %1280 = vmatpush1.xpose.msra.mxu1 %v855_v12  ;;  %v2535_v53 = vld [vmem:[#allocation5 + $0x458] sm:$0xff] }
 0x171   :  { %1211 = vmatprep.subr.mxu0 %v838_v39  ;;  %1281 = vmatprep.subr.mxu1 %v840_v41  ;;  %v972_v12 = vmul.f32 %v2535_v53, %v2917_v37  ;;  %v3108_v39 = vld [vmem:[%s3297_s2] sm:$0xff]  ;;  %v2554_v53 = vld [vmem:[#allocation5 + $0x1c8] sm:$0xff] }
 0x172   :  { %v2536_v41 = vld [vmem:[#allocation5 + $0x440] sm:$0xff] }
 0x174   :  { %1212 = vmatpush1.xpose.msra.mxu0 %v837_v16  ;;  %1282 = vmatpush1.xpose.msra.mxu1 %v839_v56  ;;  %v969_v16 = vmul.f32 %v2536_v41, %v2917_v37  ;;  %v2537_v56 = vld [vmem:[#allocation5 + $0x450] sm:$0xff]  ;;  %v2555_v41 = vld [vmem:[#allocation5 + $0x1d8] sm:$0xff] }
 0x175   :  { %1327 = vmatprep.subr.mxu0 %v1034_v48  ;;  %1397 = vmatprep.subr.mxu1 %v1036_v59  ;;  %v971_v10 = vmul.f32 %v2537_v56, %v2917_v37  ;;  %v2691_v48 = vmov 0   ;;  %v954_v59 = vmul.f32 %v2538_v33, %v2911_v29  ;;  %v2556_v56 = vld [vmem:[#allocation5 + $0x1c0] sm:$0xff] }
 0x176   :  { %2378 = vset.pattern.permute.xlu1 %v2691_v48  ;;  %2379 = vset.pattern.permute.xlu0 %v2691_v48  ;;  %v2557_v48 = vld [vmem:[#allocation5 + $0x1d0] sm:$0xff] }
 0x177   :  { %1246 = vmatmul.mubr.f32.vlgmr.msra.gmra.mxu0 %v3077_v22  ;;  %1316 = vmatmul.mubr.f32.vlgmr.msra.gmra.mxu1 %v3079_v8  ;;  %v891_v33 = vmul.f32 %v2557_v48, %v2961_v4  ;;  %v2575_v48 = vld [vmem:[#allocation5 + $0x568] sm:$0xff] }
 0x178   :  { %1328 = vmatpush1.xpose.msra.mxu0 %v1033_v1  ;;  %1398 = vmatpush1.xpose.msra.mxu1 %v1035_v57  ;;  %v956_v1 = vmul.f32 %v2539_v43, %v2911_v29  ;;  %v953_v57 = vmul.f32 %v2540_v21, %v2911_v29 }
 0x179   :  { %1329 = vmatprep.subr.mxu0 %v1018_v2  ;;  %1399 = vmatprep.subr.mxu1 %v1020_v32  ;;  %v955_v2 = vmul.f32 %v2541_v34, %v2911_v29  ;;  %v938_v32 = vmul.f32 %v2542_v5, %v2933_v0 }
 0x17a   :  { %1385 = vmatprep.mubr.f32.mxu0 %v3087_v47  ;;  %1455 = vmatprep.mubr.f32.mxu1 %v3089_v24 }
 0x17b   :  { %2167 = vperm.xlu1 %2378, %v3108_v39  }
 0x17c   :  { %1330 = vmatpush1.xpose.msra.mxu0 %v1017_v26  ;;  %1400 = vmatpush1.xpose.msra.mxu1 %v1019_v45  ;;  %v940_v26 = vmul.f32 %v2543_v61, %v2933_v0  ;;  %v937_v45 = vmul.f32 %v2544_v30, %v2933_v0 }
 0x17d   :  { %1331 = vmatprep.subr.mxu0 %v1002_v3  ;;  %1401 = vmatprep.subr.mxu1 %v1004_v38  ;;  %v939_v3 = vmul.f32 %v2545_v44, %v2933_v0  ;;  %v922_v38 = vmul.f32 %v2546_v20, %v2944_v19 }
 0x180   :  { %1332 = vmatpush1.xpose.msra.mxu0 %v1001_v63  ;;  %1402 = vmatpush1.xpose.msra.mxu1 %v1003_v6  ;;  %v924_v63 = vmul.f32 %v2547_v42, %v2944_v19  ;;  %v921_v6 = vmul.f32 %v2548_v50, %v2944_v19  ;;  %v844_v42 = vmul.f32 %v2991_v54, %v2873_v58  ;;  %v3152_v58 = vld [vmem:[#allocation2 + $0x50] sm:$0xff] }
 0x181   :  { %1333 = vmatprep.subr.mxu0 %v986_v55  ;;  %1403 = vmatprep.subr.mxu1 %v988_v62  ;;  %v923_v55 = vmul.f32 %v2549_v35, %v2944_v19  ;;  %v906_v62 = vmul.f32 %v2550_v28, %v2952_v36  ;;  %v2567_v35 = vld [vmem:[#allocation5 + $0x668] sm:$0x3]  ;;  %v2568_v28 = vld [vmem:[#allocation5 + $0x678] sm:$0x3] }
 0x184   :  { %1334 = vmatpush1.xpose.msra.mxu0 %v985_v17  ;;  %1404 = vmatpush1.xpose.msra.mxu1 %v987_v25  ;;  %v908_v17 = vmul.f32 %v2551_v40, %v2952_v36  ;;  %v905_v25 = vmul.f32 %v2552_v7, %v2952_v36  ;;  %v2569_v40 = vld [vmem:[#allocation5 + $0x660] sm:$0x3]  ;;  %v2570_v7 = vld [vmem:[#allocation5 + $0x670] sm:$0x3] }
 0x185   :  { %1335 = vmatprep.subr.mxu0 %v970_v27  ;;  %1405 = vmatprep.subr.mxu1 %v972_v12  ;;  %v907_v27 = vmul.f32 %v2553_v15, %v2952_v36  ;;  %v890_v12 = vmul.f32 %v2554_v53, %v2961_v4 }
 0x188   :  { %1336 = vmatpush1.xpose.msra.mxu0 %v969_v16  ;;  %1406 = vmatpush1.xpose.msra.mxu1 %v971_v10  ;;  %v892_v16 = vmul.f32 %v2555_v41, %v2961_v4  ;;  %v889_v10 = vmul.f32 %v2556_v56, %v2961_v4  ;;  %v3162_v41 = vld [vmem:[#allocation2 + $0x78] sm:$0xff]  ;;  %v2574_v56 = vld [vmem:[#allocation5 + $0x5f0] sm:$0xff] }
 0x189   :  { %1337 = vmatprep.subr.mxu0 %v954_v59  ;;  %1407 = vmatprep.subr.mxu1 %v956_v1  ;;  %v2558_v59 = vld [vmem:[#allocation5 + $0x148] sm:$0xff]  ;;  %v2559_v1 = vld [vmem:[#allocation5 + $0x158] sm:$0xff] }
 0x18a   :  { %v874_v43 = vmul.f32 %v2558_v59, %v2971_v49  ;;  %v876_v21 = vmul.f32 %v2559_v1, %v2971_v49  ;;  %v2576_v59 = vld [vmem:[#allocation5 + $0x578] sm:$0xff]  ;;  %v2577_v1 = vld [vmem:[#allocation5 + $0x560] sm:$0xff] }
 0x18c   :  { %1338 = vmatpush1.xpose.msra.mxu0 %v953_v57  ;;  %1408 = vmatpush1.xpose.msra.mxu1 %v955_v2  ;;  %v2560_v57 = vld [vmem:[#allocation5 + $0x140] sm:$0xff]  ;;  %v2561_v2 = vld [vmem:[#allocation5 + $0x150] sm:$0xff] }
 0x18d   :  { %1339 = vmatprep.subr.mxu0 %v938_v32  ;;  %1409 = vmatprep.subr.mxu1 %v940_v26  ;;  %v873_v34 = vmul.f32 %v2560_v57, %v2971_v49  ;;  %v875_v5 = vmul.f32 %v2561_v2, %v2971_v49  ;;  %v2562_v32 = vld [vmem:[#allocation5 + $0xc8] sm:$0xff]  ;;  %v2563_v26 = vld [vmem:[#allocation5 + $0xd8] sm:$0xff]  ;;  %v2578_v57 = vld [vmem:[#allocation5 + $0x570] sm:$0xff] }
 0x18e   :  { %v858_v61 = vmul.f32 %v2562_v32, %v2981_v14  ;;  %v860_v30 = vmul.f32 %v2563_v26, %v2981_v14 }
 0x190   :  { %1340 = vmatpush1.xpose.msra.mxu0 %v937_v45  ;;  %1410 = vmatpush1.xpose.msra.mxu1 %v939_v3  ;;  %v2564_v45 = vld [vmem:[#allocation5 + $0xc0] sm:$0xff]  ;;  %v2565_v3 = vld [vmem:[#allocation5 + $0xd0] sm:$0xff] }
 0x191   :  { %1341 = vmatprep.subr.mxu0 %v922_v38  ;;  %1411 = vmatprep.subr.mxu1 %v924_v63  ;;  %v857_v44 = vmul.f32 %v2564_v45, %v2981_v14  ;;  %v859_v20 = vmul.f32 %v2565_v3, %v2981_v14  ;;  %v842_v38 = vmul.f32 %v2991_v54, %v2867_v11  ;;  %v2566_v63 = vld [vmem:[#allocation5 + $0x40] sm:$0xff] }
 0x192   :  { %v841_v50 = vmul.f32 %v2566_v63, %v2991_v54  ;;  %v3150_v11 = vld [vmem:[#allocation2 + $0x40] sm:$0xff]  ;;  %v2586_v63 = vld [vmem:[#allocation5 + $0x470] sm:$0xff] }
 0x194   :  { %1342 = vmatpush1.xpose.msra.mxu0 %v921_v6  ;;  %1412 = vmatpush1.xpose.msra.mxu1 %v923_v55  ;;  %v843_v6 = vmul.f32 %v2991_v54, %v2869_v31  ;;  %v1038_v55 = vmul.f32 %v2567_v35, %v2879_v13  ;;  %v1039_v31 = vmul.f32 %v2570_v7, %v2879_v13  ;;  %v2591_v7 = vld [vmem:[#allocation5 + $0x368] sm:$0xff] }
 0x195   :  { %1343 = vmatprep.subr.mxu0 %v906_v62  ;;  %1413 = vmatprep.subr.mxu1 %v908_v17  ;;  %v1040_v62 = vmul.f32 %v2568_v28, %v2879_v13  ;;  %v1037_v17 = vmul.f32 %v2569_v40, %v2879_v13  ;;  %v2589_v28 = vld [vmem:[#allocation5 + $0x3e0] sm:$0xff]  ;;  %v2590_v40 = vld [vmem:[#allocation5 + $0x3f0] sm:$0xff] }
 0x198   :  { %1344 = vmatpush1.xpose.msra.mxu0 %v905_v25  ;;  %1414 = vmatpush1.xpose.msra.mxu1 %v907_v27  ;;  %v2571_v25 = vld [vmem:[#allocation5 + $0x5e8] sm:$0xff]  ;;  %v2572_v27 = vld [vmem:[#allocation5 + $0x5f8] sm:$0xff] }
 0x199   :  { %1345 = vmatprep.subr.mxu0 %v890_v12  ;;  %1415 = vmatprep.subr.mxu1 %v892_v16  ;;  %v1022_v15 = vmul.f32 %v2571_v25, %v2889_v18  ;;  %v1024_v53 = vmul.f32 %v2572_v27, %v2889_v18  ;;  %v3160_v12 = vld [vmem:[#allocation2 + $0x68] sm:$0xff]  ;;  %v2573_v16 = vld [vmem:[#allocation5 + $0x5e0] sm:$0xff] }
 0x19a   :  { %v1021_v13 = vmul.f32 %v2573_v16, %v2889_v18 }
 0x19c   :  { %1346 = vmatpush1.xpose.msra.mxu0 %v889_v10  ;;  %1416 = vmatpush1.xpose.msra.mxu1 %v891_v33  ;;  %v1023_v10 = vmul.f32 %v2574_v56, %v2889_v18  ;;  %v1006_v33 = vmul.f32 %v2575_v48, %v2885_v60  ;;  %v1007_v18 = vmul.f32 %v2578_v57, %v2885_v60  ;;  %v2597_v48 = vld [vmem:[#allocation5 + $0x2e0] sm:$0xff] }
 0x19d   :  { %1347 = vmatprep.subr.mxu0 %v874_v43  ;;  %1417 = vmatprep.subr.mxu1 %v876_v21  ;;  %v1008_v43 = vmul.f32 %v2576_v59, %v2885_v60  ;;  %v1005_v21 = vmul.f32 %v2577_v1, %v2885_v60  ;;  %v2584_v60 = vld [vmem:[#allocation5 + $0x478] sm:$0xff]  ;;  %v2598_v59 = vld [vmem:[#allocation5 + $0x2f0] sm:$0xff]  ;;  %v2599_v1 = vld [vmem:[#allocation5 + $0x268] sm:$0xff] }
 0x1a0   :  { %1348 = vmatpush1.xpose.msra.mxu0 %v873_v34  ;;  %1418 = vmatpush1.xpose.msra.mxu1 %v875_v5  ;;  %v2579_v34 = vld [vmem:[#allocation5 + $0x4e8] sm:$0xff]  ;;  %v2580_v5 = vld [vmem:[#allocation5 + $0x4f8] sm:$0xff] }
 0x1a1   :  { %1349 = vmatprep.subr.mxu0 %v858_v61  ;;  %1419 = vmatprep.subr.mxu1 %v860_v30  ;;  %v990_v2 = vmul.f32 %v2579_v34, %v2898_v46  ;;  %v992_v32 = vmul.f32 %v2580_v5, %v2898_v46  ;;  %v2581_v61 = vld [vmem:[#allocation5 + $0x4e0] sm:$0xff]  ;;  %v2582_v30 = vld [vmem:[#allocation5 + $0x4f0] sm:$0xff] }
 0x1a2   :  { %v989_v26 = vmul.f32 %v2581_v61, %v2898_v46  ;;  %v991_v45 = vmul.f32 %v2582_v30, %v2898_v46  ;;  %v2588_v46 = vld [vmem:[#allocation5 + $0x3f8] sm:$0xff]  ;;  %v2605_v30 = vld [vmem:[#allocation5 + $0x1e0] sm:$0xff] }
 0x1a4   :  { %1350 = vmatpush1.xpose.msra.mxu0 %v857_v44  ;;  %1420 = vmatpush1.xpose.msra.mxu1 %v859_v20  ;;  %v2583_v44 = vld [vmem:[#allocation5 + $0x468] sm:$0xff]  ;;  %v976_v20 = vmul.f32 %v2584_v60, %v2917_v37 }
 0x1a5   :  { %1351 = vmatprep.subr.mxu0 %v842_v38  ;;  %1421 = vmatprep.subr.mxu1 %v844_v42  ;;  %v974_v3 = vmul.f32 %v2583_v44, %v2917_v37  ;;  %v2585_v38 = vld [vmem:[#allocation5 + $0x460] sm:$0xff]  ;;  %v2606_v44 = vld [vmem:[#allocation5 + $0x1f0] sm:$0xff]  ;;  %v2607_v60 = vld [vmem:[#allocation5 + $0x168] sm:$0xff] }
 0x1a6   :  { %v973_v42 = vmul.f32 %v2585_v38, %v2917_v37 }
 0x1a8   :  { %1352 = vmatpush1.xpose.msra.mxu0 %v841_v50  ;;  %1422 = vmatpush1.xpose.msra.mxu1 %v843_v6  ;;  %v975_v50 = vmul.f32 %v2586_v63, %v2917_v37  ;;  %v2587_v6 = vld [vmem:[#allocation5 + $0x3e8] sm:$0xff]  ;;  %v2592_v37 = vld [vmem:[#allocation5 + $0x378] sm:$0xff] }
 0x1a9   :  { %1467 = vmatprep.subr.mxu0 %v1038_v55  ;;  %1537 = vmatprep.subr.mxu1 %v1040_v62  ;;  %v958_v35 = vmul.f32 %v2587_v6, %v2911_v29  ;;  %v960_v55 = vmul.f32 %v2588_v46, %v2911_v29  ;;  %v957_v62 = vmul.f32 %v2589_v28, %v2911_v29  ;;  %v2613_v28 = vld [vmem:[#allocation5 + $0xe0] sm:$0xff] }
 0x1aa   :  { %v944_v25 = vmul.f32 %v2592_v37, %v2933_v0 }
 0x1ab   :  { %1386 = vmatmul.mubr.f32.vlgmr.msra.gmra.mxu0 %v3150_v11  ;;  %1456 = vmatmul.mubr.f32.vlgmr.msra.gmra.mxu1 %v3152_v58 }
 0x1ac   :  { %1468 = vmatpush1.xpose.msra.mxu0 %v1037_v17  ;;  %1538 = vmatpush1.xpose.msra.mxu1 %v1039_v31  ;;  %v959_v17 = vmul.f32 %v2590_v40, %v2911_v29  ;;  %v942_v31 = vmul.f32 %v2591_v7, %v2933_v0  ;;  %v2596_v29 = vld [vmem:[#allocation5 + $0x2f8] sm:$0xff]  ;;  %v2614_v40 = vld [vmem:[#allocation5 + $0xf0] sm:$0xff]  ;;  %v2615_v7 = vld [vmem:[#allocation5 + $0x68] sm:$0xff] }
 0x1ad   :  { %1469 = vmatprep.subr.mxu0 %v1022_v15  ;;  %1539 = vmatprep.subr.mxu1 %v1024_v53  ;;  %v2593_v15 = vld [vmem:[#allocation5 + $0x360] sm:$0xff]  ;;  %v2594_v53 = vld [vmem:[#allocation5 + $0x370] sm:$0xff] }
 0x1ae   :  { %1525 = vmatprep.mubr.f32.mxu0 %v3160_v12  ;;  %1595 = vmatprep.mubr.f32.mxu1 %v3162_v41  ;;  %v941_v27 = vmul.f32 %v2593_v15, %v2933_v0  ;;  %v943_v16 = vmul.f32 %v2594_v53, %v2933_v0  ;;  %v2600_v0 = vld [vmem:[#allocation5 + $0x278] sm:$0xff] }
 0x1af   :  { %v912_v57 = vmul.f32 %v2600_v0, %v2952_v36 }
 0x1b0   :  { %1470 = vmatpush1.xpose.msra.mxu0 %v1021_v13  ;;  %1540 = vmatpush1.xpose.msra.mxu1 %v1023_v10  ;;  %v2595_v13 = vld [vmem:[#allocation5 + $0x2e8] sm:$0xff]  ;;  %v928_v10 = vmul.f32 %v2596_v29, %v2944_v19 }
 0x1b1   :  { %1471 = vmatprep.subr.mxu0 %v1006_v33  ;;  %1541 = vmatprep.subr.mxu1 %v1008_v43  ;;  %v926_v56 = vmul.f32 %v2595_v13, %v2944_v19  ;;  %v925_v33 = vmul.f32 %v2597_v48, %v2944_v19  ;;  %v927_v43 = vmul.f32 %v2598_v59, %v2944_v19  ;;  %v2604_v19 = vld [vmem:[#allocation5 + $0x1f8] sm:$0xff]  ;;  %v2619_v13 = vld [vmem:[#allocation2 + $0x8] sm:$0xff] }
 0x1b4   :  { %1472 = vmatpush1.xpose.msra.mxu0 %v1005_v21  ;;  %1542 = vmatpush1.xpose.msra.mxu1 %v1007_v18  ;;  %v910_v21 = vmul.f32 %v2599_v1, %v2952_v36  ;;  %v2601_v18 = vld [vmem:[#allocation5 + $0x260] sm:$0xff] }
 0x1b5   :  { %1473 = vmatprep.subr.mxu0 %v990_v2  ;;  %1543 = vmatprep.subr.mxu1 %v992_v32  ;;  %v909_v34 = vmul.f32 %v2601_v18, %v2952_v36  ;;  %v2602_v2 = vld [vmem:[#allocation5 + $0x270] sm:$0xff]  ;;  %v2603_v32 = vld [vmem:[#allocation5 + $0x1e8] sm:$0xff] }
 0x1b6   :  { %v911_v5 = vmul.f32 %v2602_v2, %v2952_v36  ;;  %v894_v61 = vmul.f32 %v2603_v32, %v2961_v4  ;;  %v2608_v36 = vld [vmem:[#allocation5 + $0x178] sm:$0xff] }
 0x1b7   :  { %v880_v38 = vmul.f32 %v2608_v36, %v2971_v49 }
 0x1b8   :  { %1474 = vmatpush1.xpose.msra.mxu0 %v989_v26  ;;  %1544 = vmatpush1.xpose.msra.mxu1 %v991_v45  ;;  %v896_v26 = vmul.f32 %v2604_v19, %v2961_v4  ;;  %v893_v45 = vmul.f32 %v2605_v30, %v2961_v4 }
 0x1b9   :  { %1475 = vmatprep.subr.mxu0 %v974_v3  ;;  %1545 = vmatprep.subr.mxu1 %v976_v20  ;;  %v895_v3 = vmul.f32 %v2606_v44, %v2961_v4  ;;  %v878_v20 = vmul.f32 %v2607_v60, %v2971_v49  ;;  %v2612_v4 = vld [vmem:[#allocation5 + $0xf8] sm:$0xff] }
 0x1bc   :  { %1476 = vmatpush1.xpose.msra.mxu0 %v973_v42  ;;  %1546 = vmatpush1.xpose.msra.mxu1 %v975_v50  ;;  %v2609_v42 = vld [vmem:[#allocation5 + $0x160] sm:$0xff]  ;;  %v2610_v50 = vld [vmem:[#allocation5 + $0x170] sm:$0xff] }
 0x1bd   :  { %1477 = vmatprep.subr.mxu0 %v958_v35  ;;  %1547 = vmatprep.subr.mxu1 %v960_v55  ;;  %v877_v63 = vmul.f32 %v2609_v42, %v2971_v49  ;;  %v879_v6 = vmul.f32 %v2610_v50, %v2971_v49  ;;  %v2611_v35 = vld [vmem:[#allocation5 + $0xe8] sm:$0xff]  ;;  %v864_v55 = vmul.f32 %v2612_v4, %v2981_v14  ;;  %v2616_v49 = vld [vmem:[#allocation5 + $0x78] sm:$0xff] }
 0x1be   :  { %v862_v46 = vmul.f32 %v2611_v35, %v2981_v14  ;;  %v848_v37 = vmul.f32 %v2616_v49, %v2991_v54 }
 0x1c0   :  { %1478 = vmatpush1.xpose.msra.mxu0 %v957_v62  ;;  %1548 = vmatpush1.xpose.msra.mxu1 %v959_v17  ;;  %v861_v62 = vmul.f32 %v2613_v28, %v2981_v14  ;;  %v863_v17 = vmul.f32 %v2614_v40, %v2981_v14  ;;  %v58_v14 = vld [vmem:[#allocation2 + $0x70] sm:$0xff] }
 0x1c1   :  { %1479 = vmatprep.subr.mxu0 %v942_v31  ;;  %1549 = vmatprep.subr.mxu1 %v944_v25  ;;  %v846_v31 = vmul.f32 %v2615_v7, %v2991_v54  ;;  %v2617_v25 = vld [vmem:[#allocation5 + $0x60] sm:$0xff] }
 0x1c2   :  { %v845_v15 = vmul.f32 %v2617_v25, %v2991_v54 }
 0x1c4   :  { %1480 = vmatpush1.xpose.msra.mxu0 %v941_v27  ;;  %1550 = vmatpush1.xpose.msra.mxu1 %v943_v16  ;;  %v2618_v27 = vld [vmem:[#allocation5 + $0x70] sm:$0xff]  ;;  %v56_v16 = vld [vmem:[#allocation2 + $0x60] sm:$0xff] }
 0x1c5   :  { %1481 = vmatprep.subr.mxu0 %v926_v56  ;;  %1551 = vmatprep.subr.mxu1 %v928_v10  ;;  %v847_v53 = vmul.f32 %v2618_v27, %v2991_v54  ;;  %v2620_v56 = vld [vmem:[#allocation2 + $0x18] sm:$0xff] }
 0x1c8   :  { %1482 = vmatpush1.xpose.msra.mxu0 %v925_v33  ;;  %1552 = vmatpush1.xpose.msra.mxu1 %v927_v43 }
 0x1c9   :  { %1483 = vmatprep.subr.mxu0 %v910_v21  ;;  %1553 = vmatprep.subr.mxu1 %v912_v57 }
 0x1cc   :  { %1484 = vmatpush1.xpose.msra.mxu0 %v909_v34  ;;  %1554 = vmatpush1.xpose.msra.mxu1 %v911_v5 }
 0x1cd   :  { %1485 = vmatprep.subr.mxu0 %v894_v61  ;;  %1555 = vmatprep.subr.mxu1 %v896_v26 }
 0x1d0   :  { %1486 = vmatpush1.xpose.msra.mxu0 %v893_v45  ;;  %1556 = vmatpush1.xpose.msra.mxu1 %v895_v3 }
 0x1d1   :  { %1487 = vmatprep.subr.mxu0 %v878_v20  ;;  %1557 = vmatprep.subr.mxu1 %v880_v38 }
 0x1d4   :  { %1488 = vmatpush1.xpose.msra.mxu0 %v877_v63  ;;  %1558 = vmatpush1.xpose.msra.mxu1 %v879_v6 }
 0x1d5   :  { %1489 = vmatprep.subr.mxu0 %v862_v46  ;;  %1559 = vmatprep.subr.mxu1 %v864_v55 }
 0x1d8   :  { %1490 = vmatpush1.xpose.msra.mxu0 %v861_v62  ;;  %1560 = vmatpush1.xpose.msra.mxu1 %v863_v17 }
 0x1d9   :  { %1491 = vmatprep.subr.mxu0 %v846_v31  ;;  %1561 = vmatprep.subr.mxu1 %v848_v37 }
 0x1dc   :  { %1492 = vmatpush1.xpose.msra.mxu0 %v845_v15  ;;  %1562 = vmatpush1.xpose.msra.mxu1 %v847_v53 }
 0x1dd   :  { %1633 = vmatprep.subr.mxu0 %v2619_v13  ;;  %1703 = vmatprep.subr.mxu1 %v2620_v56 }
 0x1df   :  { %1526 = vmatmul.mubr.f32.vlgmr.msra.gmra.mxu0 %v56_v16  ;;  %1596 = vmatmul.mubr.f32.vlgmr.msra.gmra.mxu1 %v58_v14 }
 0x1e0   :  { %1634 = vmatpush1.xpose.msra.mxu0 %v3003_v23  ;;  %1667 = vmatprep.mubr.f32.mxu0 %v2619_v13  ;;  %v2369_v13 = vld [vmem:[%s3298_s3] ss:$0 sm:$0xff]  ;;  %s2693_s3 = smov [#allocation7]  }
 0x1e1   :  { %1704 = vmatpush1.xpose.msra.mxu1 %v3005_v51  ;;  %1773 = vmatprep.subr.mxu0 %v3013_v9  ;;  %s2354_s28 = sshll.u32 %s2693_s3, 4  ;;  %s2355_s28 = int_to_ptr.vmem [resolvable:$true] %s2354_s28 }
 0x1e2   :  { %1737 = vmatprep.mubr.f32.mxu1 %v2620_v56  ;;  %1843 = vmatprep.subr.mxu1 %v3015_v52  ;;  %s2661_s29 = scalar_lea.vmem %s2355_s28, 16  ;;  %s2665_s30 = scalar_lea.vmem %s2355_s28, 32 }
 0x1e3   :  { %1668 = vmatmul.mubr.f32.vlgmr.msra.gmra.mxu0 %v3003_v23  ;;  %p2662_p10 = scmp.ne.s32.totalorder %s2355_s28, %s2661_s29  ;;  %p2666_p11 = scmp.lt.s32.totalorder %s2355_s28, %s2355_s28 }
 0x1e4   :  { %1774 = vmatpush1.xpose.msra.mxu0 %v3077_v22  ;;  %1738 = vmatmul.mubr.f32.vlgmr.msra.gmra.mxu1 %v3005_v51  ;;  %p2667_p12 = scmp.lt.s32.totalorder %s2665_s30, %s2661_s29 }
 0x1e5   :  { %1807 = vmatprep.mubr.f32.mxu0 %v3013_v9  ;;  %1844 = vmatpush1.xpose.msra.mxu1 %v3079_v8 }
 0x1e6   :  { %1913 = vmatprep.subr.mxu0 %v3087_v47  ;;  %1877 = vmatprep.mubr.f32.mxu1 %v3015_v52  ;;  %p2668_p13 = por %p2667_p12, %p2666_p11 }
 0x1e7   :  { %1808 = vmatmul.mubr.f32.vlgmr.msra.gmra.mxu0 %v3077_v22  ;;  %1983 = vmatprep.subr.mxu1 %v3089_v24  ;;  %v2164_v22 = vlaneseq }
 0x1e8   :  { %1914 = vmatpush1.xpose.msra.mxu0 %v3150_v11  ;;  %1878 = vmatmul.mubr.f32.vlgmr.msra.gmra.mxu1 %v3079_v8  ;;  %p2669_p0 = pnand %p2668_p13, %p2662_p10 }
 0x1e9   :  { %1947 = vmatprep.mubr.f32.mxu0 %v3087_v47  ;;  %1984 = vmatpush1.xpose.msra.mxu1 %v3152_v58  ;;  %v3236_v8 = vand.u32 127, %v2164_v22 }
 0x1ea   :  { %2053 = vmatprep.subr.mxu0 %v3160_v12  ;;  %2017 = vmatprep.mubr.f32.mxu1 %v3089_v24  ;;  %v2692_v24 = vmov 0.0  }
 0x1eb   :  { %1948 = vmatmul.mubr.f32.vlgmr.msra.gmra.mxu0 %v3150_v11  ;;  %2123 = vmatprep.subr.mxu1 %v3162_v41  ;;  %vm2325_vm4 = vcmp.eq.s32.totalorder %v3236_v8, 0  ;;  %vm2327_vm5 = vcmp.eq.s32.totalorder %v3236_v8, 1  ;;  %vm2335_vm6 = vcmp.eq.s32.totalorder %v3236_v8, 2  ;;  %vm2338_vm7 = vcmp.eq.s32.totalorder %v3236_v8, 3 }
 0x1ec   :  { %2054 = vmatpush1.xpose.msra.mxu0 %v56_v16  ;;  %2018 = vmatmul.mubr.f32.vlgmr.msra.gmra.mxu1 %v3152_v58  ;;  %vm2341_vm8 = vcmp.eq.s32.totalorder %v3236_v8, 4  ;;  %vm2344_vm9 = vcmp.eq.s32.totalorder %v3236_v8, 5 }
 0x1ed   :  { %2087 = vmatprep.mubr.f32.mxu0 %v3160_v12  ;;  %2124 = vmatpush1.xpose.msra.mxu1 %v58_v14 }
 0x1ee   :  { %2157 = vmatprep.mubr.f32.mxu1 %v3162_v41 }
 0x1ef   :  { %2088 = vmatmul.mubr.f32.vlgmr.msra.gmra.mxu0 %v56_v16  ;;  %v2255_v16 = vcvt.s32.f32 %v3236_v8 }
 0x1f0   :  { %2158 = vmatmul.mubr.f32.vlgmr.msra.gmra.mxu1 %v58_v14 }
 0x1f6   :  { %v3238_v47 = vpop.permute.xlu1 %2167 }
 0x1f7   :  { %vm2169_vm11 = vcmp.eq.s32.totalorder %v3236_v8, %v3238_v47  ;;  %vm2278_vm15 = vcmp.eq.s32.totalorder %v3238_v47, %v2369_v13 }
 0x1f8   :  { %v3243_v11 = vsel %vm2169_vm11, 1.0, %v2692_v24 }
 0x1f9   :  { %v2184_v58 = vsel %vm2174_vm12, %v3243_v11, 0.0  ;;  %vm2216_vm13 = vcmp.gt.f32.partialorder %v3243_v11, 0.0 }
 0x1fa   :  { %2185 = vadd.xlane.f32.xlu1 %v2184_v58  ;;  %v2370_v58 = vsel %vm2278_vm15, 1.0, %v2692_v24 }
 0x203   :  { %v1107_v54 = vpop.f32.mrf.mxu0  ;;  %v1177_v23 = vpop.f32.mrf.mxu1 }
 0x204   :  { %v1178_v51 = vadd.f32 %v1177_v23, %v1107_v54 }
 0x205   :  { %v1109_v9 = vpop.f32.mrf.mxu0  ;;  %v1179_v52 = vpop.f32.mrf.mxu1 }
 0x206   :  { %v2172_v9 = vsub.f32 1.0, %v3243_v11 }
 0x208   :  { %v2205_v22 = vsel %vm2174_vm12, %v2172_v9, 0.0 }
 0x237   :  { %v1247_v12 = vpop.f32.mrf.mxu0  ;;  %v1317_v41 = vpop.f32.mrf.mxu1 }
 0x238   :  { %v1248_v29 = vadd.f32 %v1247_v12, %v1178_v51  ;;  %v2293_v12 = vsel %vm2283_vm0, %v2370_v58, 0.0 }
 0x239   :  { %v1249_v10 = vpop.f32.mrf.mxu0  ;;  %v1319_v48 = vpop.f32.mrf.mxu1 }
 0x23a   :  { %v1318_v33 = vadd.f32 %v1317_v41, %v1248_v29  ;;  %v2281_v10 = vsub.f32 1.0, %v2370_v58 }
 0x23c   :  { %v2314_v47 = vsel %vm2283_vm0, %v2281_v10, 0.0 }
 0x26b   :  { %v1387_v59 = vpop.f32.mrf.mxu0  ;;  %v1457_v43 = vpop.f32.mrf.mxu1 }
 0x26c   :  { %v1388_v0 = vadd.f32 %v1387_v59, %v1318_v33 }
 0x26d   :  { %v1389_v1 = vpop.f32.mrf.mxu0  ;;  %v1459_v21 = vpop.f32.mrf.mxu1 }
 0x26e   :  { %v1458_v57 = vadd.f32 %v1457_v43, %v1388_v0 }
 0x29f   :  { %v1527_v18 = vpop.f32.mrf.mxu0  ;;  %v1597_v34 = vpop.f32.mrf.mxu1 }
 0x2a0   :  { %v1528_v2 = vadd.f32 %v1527_v18, %v1458_v57 }
 0x2a1   :  { %v1529_v5 = vpop.f32.mrf.mxu0  ;;  %v1599_v32 = vpop.f32.mrf.mxu1 }
 0x2a2   :  { %v1598_v61 = vadd.f32 %v1597_v34, %v1528_v2  ;;  %v2260_v2 = vcvt.s32.f32 %v3108_v39 }
 0x2a3   :  { %v1669_v19 = vpop.f32.mrf.mxu0 }
 0x2a4   :  { %v3247_v26 = vclamps-f32 %v1598_v61, 1.0  ;;  %v1739_v30 = vpop.f32.mrf.mxu1 }
 0x2a5   :  { %v1671_v45 = vpop.f32.mrf.mxu0  ;;  %v1740_v44 = vadd.f32 %v1739_v30, %v1669_v19 }
 0x2a6   :  { %v2365_v3 = vadd.f32 -2.0, %v3247_v26  ;;  %v1741_v60 = vpop.f32.mrf.mxu1  ;;  %v2173_v48 = vmul.f32 %v3243_v11, %v3247_v26  ;;  %v2195_v21 = vmul.f32 %v3247_v26, %v2172_v9 }
 0x2a7   :  { %v1809_v20 = vpop.f32.mrf.mxu0 }
 0x2a8   :  { %v2217_v36 = vsel %vm2216_vm13, %v2365_v3, %v3247_v26  ;;  %v1810_v38 = vadd.f32 %v1809_v20, %v1740_v44  ;;  %v1879_v42 = vpop.f32.mrf.mxu1  ;;  %v2175_v59 = vsel %vm2174_vm12, %v2173_v48, 0.0  ;;  %v2196_v0 = vsel %vm2174_vm12, %v2195_v21, 0.0 }
 0x2a9   :  { %v2218_v63 = vmul.f32 10.0, %v2217_v36  ;;  %v1811_v50 = vpop.f32.mrf.mxu0 }
 0x2aa   :  { %v1880_v6 = vadd.f32 %v1879_v42, %v1810_v38  ;;  %v1881_v35 = vpop.f32.mrf.mxu1 }
 0x2ab   :  { %v1949_v46 = vpop.f32.mrf.mxu0  ;;  %v2223_v4 = vsel %vm2174_vm12, %v2218_v63, -inf  ;;  %v2226_v62 = vsel %vm2216_vm13, -inf, %v2218_v63  ;;  %v2219_v41 = vmul.f32 %v3243_v11, %v2218_v63 }
 0x2ac   :  { %v1950_v55 = vadd.f32 %v1949_v46, %v1880_v6  ;;  %2224 = vmax.xlane.f32.xlu0 %v2223_v4  ;;  %v2019_v28 = vpop.f32.mrf.mxu1  ;;  %v2227_v49 = vsel %vm2174_vm12, %v2226_v62, -inf  ;;  %v2186_v6 = vpop.xlane.xlu1 %2185 }
 0x2ad   :  { %v1951_v40 = vpop.f32.mrf.mxu0  ;;  %v2220_v29 = vsel %vm2174_vm12, %v2219_v41, 0.0  ;;  %v2187_v46 = vrot.slane %v2186_v6, 4 }
 0x2ae   :  { %v2020_v17 = vadd.f32 %v2019_v28, %v1950_v55  ;;  %v2021_v7 = vpop.f32.mrf.mxu1 }
 0x2af   :  { %v2089_v31 = vpop.f32.mrf.mxu0  ;;  %v2188_v62 = vadd.f32 %v2187_v46, %v2186_v6 }
 0x2b0   :  { %v2090_v37 = vadd.f32 %v2089_v31, %v2020_v17  ;;  %2228 = vmax.xlane.f32.xlu0 %v2227_v49  ;;  %v2159_v25 = vpop.f32.mrf.mxu1 }
 0x2b1   :  { %v2091_v15 = vpop.f32.mrf.mxu0 }
 0x2b2   :  { %v2160_v27 = vadd.f32 %v2159_v25, %v2090_v37  ;;  %v2161_v53 = vpop.f32.mrf.mxu1  ;;  %v2189_v37 = vrot.slane %v2188_v62, 2 }
 0x2b4   :  { %v2282_v57 = vmul.f32 %v2370_v58, %v2160_v27  ;;  %v2304_v34 = vmul.f32 %v2281_v10, %v2160_v27  ;;  %v2190_v13 = vadd.f32 %v2189_v37, %v2188_v62 }
 0x2b6   :  { %v2284_v18 = vsel %vm2283_vm0, %v2282_v57, 0.0  ;;  %v2305_v11 = vsel %vm2283_vm0, %v2304_v34, 0.0 }
 0x335   :  { %v3259_v14 = vpop.xlane.xlu0 %2224 }
 0x336   :  { %vm2254_vm14 = vcmp.eq.f32.partialorder %v2218_v63, %v3259_v14 }
 0x337   :  { %v2256_v56 = vsel %vm2254_vm14, %v2255_v16, 98.0 }
 0x338   :  { %v2257_v54 = vsel %vm2174_vm12, %v2256_v56, inf }
 0x339   :  { %2258 = vmin.xlane.f32.xlu0 %v2257_v54  ;;  %v2229_v23 = vpop.xlane.xlu0 %2228 }
 0x33a   :  { %v2230_v51 = vsub.f32 %v2218_v63, %v2229_v23 }
 0x33c   :  { %v2231_v52 = vmul.f32 1.442695, %v2230_v51 }
 0x33d   :  { %2206 = vadd.xlane.f32.xlu0 %v2205_v22 }
 0x33e   :  { %2432 = vpow2.f32 %v2231_v52  ;;  %v2191_v52 = vrot.slane %v2190_v13, 1 }
 0x340   :  { %v2192_v48 = vadd.f32 %v2191_v52, %v2190_v13 }
 0x341   :  { %2294 = vadd.xlane.f32.xlu0 %v2293_v12 }
 0x345   :  { %2221 = vadd.xlane.f32.xlu0 %v2220_v29 }
 0x349   :  { %2315 = vadd.xlane.f32.xlu0 %v2314_v47 }
 0x34b   :  { %v2433_v33 = vpop.eup %2432 }
 0x34c   :  { %v2233_v43 = vmul.f32 %v2433_v33, %v2172_v9 }
 0x34d   :  { %2176 = vadd.xlane.f32.xlu0 %v2175_v59 }
 0x34e   :  { %v2234_v1 = vsel %vm2174_vm12, %v2233_v43, 0.0 }
 0x351   :  { %2235 = vadd.xlane.f32.xlu0 %v2234_v1 }
 0x355   :  { %2197 = vadd.xlane.f32.xlu0 %v2196_v0 }
 0x359   :  { %2285 = vadd.xlane.f32.xlu0 %v2284_v18 }
 0x35d   :  { %2306 = vadd.xlane.f32.xlu0 %v2305_v11 }
 0x3c2   :  { %v2259_v5 = vpop.xlane.xlu0 %2258 }
 0x3c3   :  { %vm2261_vm2 = vcmp.eq.f32.partialorder %v2259_v5, %v2260_v2 }
 0x3c4   :  { %v2368_v32 = vsel %vm2261_vm2, 1.0, %v2692_v24 }
 0x3c5   :  { %v2266_v61 = vsel %vm2265_vm1, %v2368_v32, 0.0 }
 0x3c6   :  { %v2267_v19 = vrot.slane %v2266_v61, 4  ;;  %v2207_v20 = vpop.xlane.xlu0 %2206 }
 0x3c7   :  { %v2208_v28 = vrot.slane %v2207_v20, 4 }
 0x3c8   :  { %v2268_v26 = vadd.f32 %v2267_v19, %v2266_v61 }
 0x3c9   :  { %v2209_v31 = vadd.f32 %v2208_v28, %v2207_v20 }
 0x3ca   :  { %v2269_v30 = vrot.slane %v2268_v26, 2  ;;  %v2295_v36 = vpop.xlane.xlu0 %2294 }
 0x3cb   :  { %v2296_v40 = vrot.slane %v2295_v36, 4  ;;  %v2210_v53 = vrot.slane %v2209_v31, 2 }
 0x3cc   :  { %v2270_v45 = vadd.f32 %v2269_v30, %v2268_v26 }
 0x3cd   :  { %v2297_v15 = vadd.f32 %v2296_v40, %v2295_v36 }
 0x3ce   :  { %v2271_v44 = vrot.slane %v2270_v45, 1  ;;  %v2222_v38 = vpop.xlane.xlu0 %2221 }
 0x3cf   :  { %v2241_v4 = vsub.f32 %v3259_v14, %v2222_v38  ;;  %v2298_v54 = vrot.slane %v2297_v15, 2 }
 0x3d0   :  { %v2272_v3 = vadd.f32 %v2271_v44, %v2270_v45 }
 0x3d1   :  { %vm2242_vm3 = vcmp.gt.f32.partialorder %v2241_v4, 0.0  ;;  %v2299_v22 = vadd.f32 %v2298_v54, %v2297_v15 }
 0x3d2   :  { %v2273_v60 = vmul.f32 0.125, %v2272_v3  ;;  %v2316_v42 = vpop.xlane.xlu0 %2315  ;;  %v2367_v25 = vsel %vm2242_vm3, 1.0, %v2692_v24 }
 0x3d3   :  { %v2317_v49 = vrot.slane %v2316_v42, 4  ;;  %v2300_v33 = vrot.slane %v2299_v22, 1 }
 0x3d4   :  { %2330 = vperm.xlu0 %2379, %v2273_v60  }
 0x3d5   :  { %v2318_v16 = vadd.f32 %v2317_v49, %v2316_v42  ;;  %v2301_v34 = vadd.f32 %v2300_v33, %v2299_v22 }
 0x3d6   :  { %v2177_v63 = vpop.xlane.xlu0 %2176 }
 0x3d7   :  { %v2319_v51 = vrot.slane %v2318_v16, 2  ;;  %v2178_v9 = vrot.slane %v2177_v63, 4 }
 0x3d9   :  { %v2320_v10 = vadd.f32 %v2319_v51, %v2318_v16  ;;  %v2179_v47 = vadd.f32 %v2178_v9, %v2177_v63 }
 0x3da   :  { %v2236_v39 = vpop.xlane.xlu0 %2235 }
 0x3db   :  { %2434 = vlog2.f32 %v2236_v39  ;;  %v2321_v0 = vrot.slane %v2320_v10, 1  ;;  %v2180_v57 = vrot.slane %v2179_v47, 2 }
 0x3dc   :  { %2436 = vrcp.f32 %v2192_v48 }
 0x3dd   :  { %v2322_v32 = vadd.f32 %v2321_v0, %v2320_v10  ;;  %v2181_v61 = vadd.f32 %v2180_v57, %v2179_v47 }
 0x3de   :  { %v2198_v7 = vpop.xlane.xlu0 %2197 }
 0x3df   :  { %v2199_v58 = vrot.slane %v2198_v7, 4  ;;  %v2182_v44 = vrot.slane %v2181_v61, 1 }
 0x3e1   :  { %v2200_v59 = vadd.f32 %v2199_v58, %v2198_v7 }
 0x3e2   :  { %v2286_v56 = vpop.xlane.xlu0 %2285 }
 0x3e3   :  { %v2287_v24 = vrot.slane %v2286_v56, 4  ;;  %v2201_v11 = vrot.slane %v2200_v59, 2 }
 0x3e5   :  { %v2288_v18 = vadd.f32 %v2287_v24, %v2286_v56  ;;  %v2202_v26 = vadd.f32 %v2201_v11, %v2200_v59 }
 0x3e6   :  { %v2307_v41 = vpop.xlane.xlu0 %2306 }
 0x3e7   :  { %v2308_v43 = vrot.slane %v2307_v41, 4  ;;  %v2289_v19 = vrot.slane %v2288_v18, 2  ;;  %v2203_v60 = vrot.slane %v2202_v26, 1 }
 0x3e8   :  { %v2435_v50 = vpop.eup %2434 }
 0x3e9   :  { %v2238_v35 = vmul.f32 0.6931472, %v2435_v50  ;;  %v2309_v2 = vadd.f32 %v2308_v43, %v2307_v41  ;;  %v2290_v3 = vadd.f32 %v2289_v19, %v2288_v18  ;;  %v2437_v63 = vpop.eup %2436  ;;  %v2204_v39 = vadd.f32 %v2203_v60, %v2202_v26 }
 0x3eb   :  { %v2239_v55 = vadd.f32 %v2238_v35, %v2229_v23  ;;  %v2211_v23 = vadd.f32 %v2210_v53, %v2209_v31  ;;  %v2310_v30 = vrot.slane %v2309_v2, 2  ;;  %v2291_v42 = vrot.slane %v2290_v3, 1 }
 0x3ed   :  { %v2240_v17 = vsub.f32 %v2239_v55, %v2222_v38  ;;  %v2212_v29 = vrot.slane %v2211_v23, 1  ;;  %v2311_v20 = vadd.f32 %v2310_v30, %v2309_v2  ;;  %v2183_v38 = vadd.f32 %v2182_v44, %v2181_v61 }
 0x3ee   :  { %v2292_v35 = vadd.f32 %v2291_v42, %v2290_v3 }
 0x3ef   :  { %v2245_v27 = vmul.f32 %v2367_v25, %v2240_v17  ;;  %v2213_v21 = vadd.f32 %v2212_v29, %v2211_v23  ;;  %v2312_v50 = vrot.slane %v2311_v20, 1  ;;  %v2194_v46 = vmul.f32 %v2437_v63, %v2183_v38 }
 0x3f1   :  { %v2247_v14 = vrot.slane %v2245_v27, 4  ;;  %2438 = vrcp.f32 %v2213_v21  ;;  %v2313_v62 = vadd.f32 %v2312_v50, %v2311_v20  ;;  %v2336_v37 = vsel %vm2335_vm6, %v2194_v46, 0.0 }
 0x3f2   :  { %2440 = vrcp.f32 %v2301_v34 }
 0x3f3   :  { %v2248_v12 = vadd.f32 %v2247_v14, %v2245_v27  ;;  %2442 = vrcp.f32 %v2322_v32 }
 0x3f5   :  { %v2249_v1 = vrot.slane %v2248_v12, 2 }
 0x3f7   :  { %v2250_v5 = vadd.f32 %v2249_v1, %v2248_v12 }
 0x3f9   :  { %v2251_v45 = vrot.slane %v2250_v5, 1 }
 0x3fb   :  { %v2252_v36 = vadd.f32 %v2251_v45, %v2250_v5 }
 0x3fd   :  { %v2253_v6 = vmul.f32 0.125, %v2252_v36 }
 0x3fe   :  { %v2439_v4 = vpop.eup %2438 }
 0x3ff   :  { %v2215_v28 = vmul.f32 %v2439_v4, %v2204_v39  ;;  %v2326_v40 = vsel %vm2325_vm4, %v2253_v6, 0.0  ;;  %v2441_v7 = vpop.eup %2440 }
 0x400   :  { %v2303_v49 = vmul.f32 %v2441_v7, %v2292_v35  ;;  %v2443_v25 = vpop.eup %2442 }
 0x401   :  { %v2339_v27 = vsel %vm2338_vm7, %v2215_v28, 0.0  ;;  %v2324_v53 = vmul.f32 %v2443_v25, %v2313_v62 }
 0x402   :  { %v2342_v13 = vsel %vm2341_vm8, %v2303_v49, 0.0 }
 0x403   :  { %v2345_v54 = vsel %vm2344_vm9, %v2324_v53, 0.0 }
 0x44f   :  { %v2331_v55 = vpop.permute.xlu0 %2330 }
 0x450   :  { %v2333_v17 = vsel %vm2327_vm5, %v2331_v55, 0.0 }
 0x451   :  { %v2334_v31 = vadd.f32 %v2333_v17, %v2326_v40 }
 0x453   :  { %v2337_v15 = vadd.f32 %v2336_v37, %v2334_v31 }
 0x455   :  { %v2340_v16 = vadd.f32 %v2339_v27, %v2337_v15 }
 0x457   :  { %v2343_v56 = vadd.f32 %v2342_v13, %v2340_v16 }
 0x459   :  { %v2346_v14 = vadd.f32 %v2345_v54, %v2343_v56 }
 0x45b   :  { %2347 = vst [vmem:[#allocation7] sm:$0x1] %v2346_v14 }
 0x45c   :  { %2672 = shalt.err (!%p2669_p0)
}
 0x45d   :  { %2357 = dma.vmem_to_hbm [thread:$0]  %s2355_s28, 16, %s3299_s4, [#allocation4]  }
 0x45e   :  { %2685 = dma.done.wait [#allocation4], 16  }
 0x45f   :  { %2686 = vsyncadd [#allocation4], 4294967280 }
 0x460   :  { %2361 = vsyncpa [#allocation3], 1 }
 0x461   :  { %2362 = vsyncpa [#allocation6], 1 }
 0x462   :  { %2363 = vsyncpa [#allocation4], 1 }

</bundles_post_ra>
